<compile_context>
chip_gen: v6e
topology: v6e:2x2x1
jax: 0.10.0
libtpu: 0.0.40
codegen_flags: <defaults>
</compile_context>

<pallas_src>
import functools

import jax
import jax.numpy as jnp
from jax.experimental import pallas as pl
from jax.experimental.pallas import tpu as pltpu


# -----------------------------------------------------------------------------
# Module configuration (mirrors the PyTorch __init__ arguments)
# -----------------------------------------------------------------------------
PRE_FILTER_SIZES = (10, 3, 3)
PRE_STRIDES = (5, 2, 2)
PRE_PADDINGS = (2, 1, 1)
PRE_HIDDEN = 8
EFF_FEAT = 32                      # surrogate EfficientNet feature channels
POOL_OUT = (1, 16, 1024)           # nn.AdaptiveAvgPool3d target
DIMENSION = POOL_OUT[0] * POOL_OUT[1] * POOL_OUT[2]   # 16384 projector input dim
HIDDEN_SIZE = 64
PROJECTION_SIZE = 32
BN_EPS = 1e-5
LEAKY_SLOPE = 0.01                 # nn.LeakyReLU default
COS_EPS_SQ = 1e-24                 # clamp on squared norm (F.normalize eps=1e-12)

# bf16 weights halve weight DMA bytes and double MXU rate on v6e/v7x; all
# accumulation / BN / loss math stays f32.  Set to jnp.float32 for exact f32
# numerics (e.g. v5e preference).
WEIGHT_DTYPE = jnp.bfloat16

# fused rep-consumer weight column layout (128-aligned blocks)
FUSED_MW, FUSED_H, FUSED_MC, FUSED_W = 0, 128, 256, 384
# packed output slab column layout (128-aligned blocks)
OUT_PRE, OUT_MW, OUT_MC, OUT_LOSS, OUT_W = 0, 128, 256, 384, 512
# parameter slab geometry
PSLAB_ROWS, PSLAB_W = 8, 512


# -----------------------------------------------------------------------------
# Small shape helpers (pure Python ints)
# -----------------------------------------------------------------------------
def _rup(n, m):
    return ((n + m - 1) // m) * m


def _conv_out(n, k, s, p):
    return (n + 2 * p - k) // s + 1


def trunk_dims(L):
    lens = []
    l = L
    for k, s, p in zip(PRE_FILTER_SIZES, PRE_STRIDES, PRE_PADDINGS):
        l = _conv_out(l, k, s, p)
        lens.append(l)
    l3 = lens[-1]
    hh = _conv_out(PRE_HIDDEN, 3, 2, 1)   # surrogate stem: k3 s2 p1
    ww = _conv_out(l3, 3, 2, 1)
    return lens, hh, ww


def _pad2(a, rows, cols):
    return jnp.zeros((rows, cols), a.dtype).at[: a.shape[0], : a.shape[1]].set(a)


# -----------------------------------------------------------------------------
# Parameter-only folding helpers (plain JAX, run once per parameter update)
# -----------------------------------------------------------------------------
def conv1d_as_matrix(w, lin, stride, pad):
    """Fold Conv1d weight (Cout,Cin,k) into a dense (Cin*lin, Cout*lout) matrix."""
    cout, cin, k = w.shape
    lout = (lin + 2 * pad - k) // stride + 1
    p = jnp.arange(lin)
    t = jnp.arange(lout)
    tap = p[:, None] - t[None, :] * stride + pad               # (lin, lout)
    valid = (tap >= 0) & (tap < k)
    tap_c = jnp.clip(tap, 0, k - 1)
    wg = w[:, :, tap_c] * valid.astype(w.dtype)                # (cout,cin,lin,lout)
    m = jnp.transpose(wg, (1, 2, 0, 3)).reshape(cin * lin, cout * lout)
    return m, lout


def conv2d_as_matrix(w, hin, win, stride, pad):
    """Fold Conv2d weight (Cout,Cin,kh,kw) into (Cin*H*W, Cout*Ho*Wo)."""
    cout, cin, kh, kw = w.shape
    hout = (hin + 2 * pad - kh) // stride + 1
    wout = (win + 2 * pad - kw) // stride + 1
    yi = jnp.arange(hin)
    yo = jnp.arange(hout)
    xi = jnp.arange(win)
    xo = jnp.arange(wout)
    ty = yi[:, None] - yo[None, :] * stride + pad              # (hin, hout)
    tx = xi[:, None] - xo[None, :] * stride + pad              # (win, wout)
    vy = (ty >= 0) & (ty < kh)
    vx = (tx >= 0) & (tx < kw)
    tyc = jnp.clip(ty, 0, kh - 1)
    txc = jnp.clip(tx, 0, kw - 1)
    wg = w[:, :, tyc[:, :, None, None], txc[None, None, :, :]]   # (co,ci,hi,ho,wi,wo)
    wg = wg * (vy[:, :, None, None] & vx[None, None, :, :]).astype(w.dtype)
    m = jnp.transpose(wg, (1, 2, 4, 0, 3, 5)).reshape(cin * hin * win,
                                                      cout * hout * wout)
    return m, hout, wout


def adaptive_pool_matrix(in_size, out_size):
    """(out,in) matrix reproducing PyTorch adaptive-avg-pool bin rule."""
    i = jnp.arange(out_size)
    starts = (i * in_size) // out_size
    ends = ((i + 1) * in_size + out_size - 1) // out_size
    j = jnp.arange(in_size)
    mask = (j[None, :] >= starts[:, None]) & (j[None, :] < ends[:, None])
    counts = (ends - starts).astype(jnp.float32)
    return mask.astype(jnp.float32) / counts[:, None]


def prepare_params(params, L):
    """Fold all parameters into padded, fused, lane-aligned matrices.

    Run ONCE per parameter update (hoisted out of the jitted forward)."""
    f32 = jnp.float32
    lens, hh, ww = trunk_dims(L)
    l1, l2, l3 = lens
    C = EFF_FEAT

    # --- prenetwork Conv1d stack -> dense matmuls, padded to (8,128) shapes
    (w1c, b1c), (w2c, b2c), (w3c, b3c) = params["pre"]
    m1, _ = conv1d_as_matrix(w1c, L, PRE_STRIDES[0], PRE_PADDINGS[0])
    m2, _ = conv1d_as_matrix(w2c, l1, PRE_STRIDES[1], PRE_PADDINGS[1])
    m3, _ = conv1d_as_matrix(w3c, l2, PRE_STRIDES[2], PRE_PADDINGS[2])
    k1 = _rup(m1.shape[0], 128)
    n1 = _rup(m1.shape[1], 128)
    n2 = _rup(m2.shape[1], 128)
    n3 = _rup(m3.shape[1], 128)
    m1p = _pad2(m1, k1, n1)           # zero K/N padding is exact
    m2p = _pad2(m2, n1, n2)
    m3p = _pad2(m3, n2, n3)
    bb1 = jnp.repeat(b1c, l1)
    bb2 = jnp.repeat(b2c, l2)
    bb3 = jnp.repeat(b3c, l3)

    # --- encoder: fold Conv2d(1,3,1x1) INTO the surrogate stem conv (exact:
    #     there is no nonlinearity between them)
    enc = params["enc"]
    m1x1, h_a, w_a = conv2d_as_matrix(enc["conv1x1_w"], PRE_HIDDEN, l3, 1, 0)
    mstem, hh2, ww2 = conv2d_as_matrix(enc["stem_w"], h_a, w_a, 2, 1)
    assert (hh2, ww2) == (hh, ww)
    bb1x1 = jnp.repeat(enc["conv1x1_b"], h_a * w_a)
    bbstem = jnp.repeat(enc["stem_b"], hh * ww)
    menc = m1x1 @ mstem                                        # (64, 512)
    benc = bb1x1[None, :] @ mstem + bbstem[None, :]            # (1, 512)
    mencp = _pad2(menc, n3, _rup(menc.shape[1], 128))
    rep_w = mencp.shape[1]                                     # = C*hh*ww

    assert rep_w == C * hh * ww
    assert POOL_OUT[1] % hh == 0 and POOL_OUT[2] % C == 0 and POOL_OUT[2] % ww == 0
    assert C * hh <= 128 and hh * ww <= 128 and 2 * HIDDEN_SIZE == 128
    assert n3 == 128
    assert max(n1, n2, n3, rep_w) <= PSLAB_W

    # --- pool-mean matrices (exact means over the fully-pooled axis)
    f = jnp.arange(rep_w)
    c_idx = f // (hh * ww)
    j_idx = (f // ww) % hh
    i_idx = f % ww
    aw = jnp.zeros((rep_w, C * hh), f32).at[f, c_idx * hh + j_idx].set(1.0 / ww)
    ac = jnp.zeros((rep_w, hh * ww), f32).at[f, j_idx * ww + i_idx].set(1.0 / C)

    # --- fold AdaptiveAvgPool3d + flatten into the projector first Linear
    proj_p = params["proj"]
    # online branch: permute(0,3,2,1) THEN pool (w->1, h->16, C->1024), flatten
    Pw = adaptive_pool_matrix(ww, POOL_OUT[0])
    Ph = adaptive_pool_matrix(hh, POOL_OUT[1])
    Pc = adaptive_pool_matrix(C, POOL_OUT[2])
    w1r = proj_p["w1"].reshape(POOL_OUT[0], POOL_OUT[1], POOL_OUT[2], HIDDEN_SIZE)
    t = jnp.einsum("ck,abcn->abkn", Pc, w1r)
    t = jnp.einsum("bj,abkn->ajkn", Ph, t)
    w1o = jnp.einsum("ai,ajkn->kjin", Pw, t).reshape(rep_w, HIDDEN_SIZE)
    # target branch: pool (C->1, h->16, w->1024) THEN permute(0,3,2,1), flatten
    # NOTE: target nets are fresh deepcopies => same weights; with EMA-updated
    # targets use the target projector's w1 here instead.
    Qc = adaptive_pool_matrix(C, POOL_OUT[0])
    Qh = adaptive_pool_matrix(hh, POOL_OUT[1])
    Qw = adaptive_pool_matrix(ww, POOL_OUT[2])
    w1tr = proj_p["w1"].reshape(POOL_OUT[2], POOL_OUT[1], POOL_OUT[0], HIDDEN_SIZE)
    t = jnp.einsum("di,dban->iban", Qw, w1tr)
    t = jnp.einsum("bj,iban->ijan", Qh, t)
    w1t = jnp.einsum("ac,ijan->cjin", Qc, t).reshape(rep_w, HIDDEN_SIZE)

    # --- one fused (rep_w, 384) weight: [mean_w | W1(on)|W1(tg) | mean_C | pad]
    wfused = jnp.zeros((rep_w, FUSED_W), f32)
    wfused = wfused.at[:, FUSED_MW:FUSED_MW + C * hh].set(aw)
    wfused = wfused.at[:, FUSED_H:FUSED_H + HIDDEN_SIZE].set(w1o)
    wfused = wfused.at[:, FUSED_H + HIDDEN_SIZE:FUSED_H + 2 * HIDDEN_SIZE].set(w1t)
    wfused = wfused.at[:, FUSED_MC:FUSED_MC + hh * ww].set(ac)

    # --- projector 2nd linear, block-diagonal so online|target stay lane-packed
    pw2 = proj_p["w2"]
    pw2blk = jnp.zeros((2 * HIDDEN_SIZE, 2 * PROJECTION_SIZE), f32)
    pw2blk = pw2blk.at[:HIDDEN_SIZE, :PROJECTION_SIZE].set(pw2)
    pw2blk = pw2blk.at[HIDDEN_SIZE:, PROJECTION_SIZE:].set(pw2)

    # --- predictor 1st linear with zero rows so target lanes contribute nothing
    pred_p = params["pred"]
    qw1pad = jnp.zeros((2 * PROJECTION_SIZE, HIDDEN_SIZE), f32)
    qw1pad = qw1pad.at[:PROJECTION_SIZE, :].set(pred_p["w1"])
    qw2 = pred_p["w2"]

    # --- all (1, N) biases / BN affines packed into one lane-dense slab
    pslab = jnp.zeros((PSLAB_ROWS, PSLAB_W), f32)
    pslab = pslab.at[0, :bb1.shape[0]].set(bb1)
    pslab = pslab.at[1, :bb2.shape[0]].set(bb2)
    pslab = pslab.at[2, :bb3.shape[0]].set(bb3)
    pslab = pslab.at[3, :benc.shape[1]].set(benc[0])
    row4 = jnp.concatenate([jnp.tile(proj_p["b1"], 2), jnp.tile(proj_p["gamma"], 2),
                            jnp.tile(proj_p["beta"], 2), jnp.tile(proj_p["b2"], 2)])
    pslab = pslab.at[4, :row4.shape[0]].set(row4)
    row5 = jnp.concatenate([pred_p["b1"], pred_p["gamma"],
                            pred_p["beta"], pred_p["b2"]])
    pslab = pslab.at[5, :row5.shape[0]].set(row5)

    wd = WEIGHT_DTYPE
    return {
        "m1": m1p.astype(wd), "m2": m2p.astype(wd), "m3": m3p.astype(wd),
        "menc": mencp.astype(wd), "wfused": wfused.astype(wd),
        "pw2": pw2blk.astype(wd), "qw1": qw1pad.astype(wd), "qw2": qw2.astype(wd),
        "pslab": pslab.astype(jnp.float32),
    }


# -----------------------------------------------------------------------------
# The single fused Pallas kernel
# -----------------------------------------------------------------------------
def _wave_byol_kernel(x_ref, m1_ref, m2_ref, m3_ref, menc_ref, wfused_ref,
                      pw2_ref, qw1_ref, qw2_ref, ps_ref, out_ref, *, batch, rows):
    f32 = jnp.float32

    def mm(a, w):
        # bf16 operands, f32 accumulation on the MXU
        return jnp.dot(a.astype(w.dtype), w, preferred_element_type=f32)

    def leaky(y):
        return jnp.where(y >= 0, y, LEAKY_SLOPE * y)

    ps = ps_ref[...]                                   # (8, 512) parameter slab

    # Per-call BatchNorm1d statistics: real rows are grouped as [view01 | view02]
    # blocks of `batch`; padded rows get zero weight so they never pollute the
    # real statistics.  Built from iota -> no O(B^2) HBM input.
    ri = jax.lax.broadcasted_iota(jnp.int32, (rows, rows), 0)
    ci = jax.lax.broadcasted_iota(jnp.int32, (rows, rows), 1)
    g0 = (ri < batch) & (ci < batch)
    g1 = (ri >= batch) & (ri < 2 * batch) & (ci >= batch) & (ci < 2 * batch)
    gmat = jnp.where(g0 | g1, 1.0 / batch, 0.0).astype(f32)

    def bn_relu(h, gamma, beta):
        mu = jnp.dot(gmat, h, preferred_element_type=f32)
        d = h - mu
        var = jnp.dot(gmat, d * d, preferred_element_type=f32)   # biased variance
        return jnp.maximum(d * jax.lax.rsqrt(var + BN_EPS) * gamma + beta, 0.0)

    # ---- PreNetwork: 3x (Conv1d + LeakyReLU), convs folded to dense matmuls
    h = leaky(mm(x_ref[...], m1_ref[...]) + ps[0:1, 0:m1_ref.shape[1]])
    h = leaky(mm(h, m2_ref[...]) + ps[1:2, 0:m2_ref.shape[1]])
    pre = leaky(mm(h, m3_ref[...]) + ps[2:3, 0:m3_ref.shape[1]])   # (rows, 128)

    # ---- EncoderNetwork: Conv2d(1,3,1x1) pre-folded into the surrogate stem.
    # TODO(synk): EfficientNet-b4 extract_features (pretrained MBConv stack) has
    # no in-script equivalent; surrogate = Conv2d(3,32,3,s=2,p=1) + SiLU.
    e = mm(pre, menc_ref[...]) + ps[3:4, 0:menc_ref.shape[1]]
    rep = e * jax.nn.sigmoid(e)                                    # (rows, 512)

    # ---- single MXU pass over rep: [mean_w | W1(online)|W1(target) | mean_C]
    fused = mm(rep, wfused_ref[...])                               # (rows, 384)

    # ---- Projector: online|target lane-packed, BN per B-row group
    h1 = fused[:, FUSED_H:FUSED_MC] + ps[4:5, 0:2 * HIDDEN_SIZE]
    h1 = bn_relu(h1, ps[4:5, 2 * HIDDEN_SIZE:4 * HIDDEN_SIZE],
                 ps[4:5, 4 * HIDDEN_SIZE:6 * HIDDEN_SIZE])
    proj = mm(h1, pw2_ref[...]) + ps[4:5, 6 * HIDDEN_SIZE:
                                     6 * HIDDEN_SIZE + 2 * PROJECTION_SIZE]

    # ---- Predictor on the online projections (target lanes hit zero rows)
    h2 = mm(proj, qw1_ref[...]) + ps[5:6, 0:HIDDEN_SIZE]
    h2 = bn_relu(h2, ps[5:6, HIDDEN_SIZE:2 * HIDDEN_SIZE],
                 ps[5:6, 2 * HIDDEN_SIZE:3 * HIDDEN_SIZE])
    pred = mm(h2, qw2_ref[...]) + ps[5:6, 3 * HIDDEN_SIZE:
                                     3 * HIDDEN_SIZE + PROJECTION_SIZE]

    # ---- BYOL loss: pred(view01) vs target_proj(view02) and vice versa
    z = proj[:, PROJECTION_SIZE:2 * PROJECTION_SIZE]
    pn = pred * jax.lax.rsqrt(jnp.maximum(
        jnp.sum(pred * pred, axis=-1, keepdims=True), COS_EPS_SQ))
    zn = z * jax.lax.rsqrt(jnp.maximum(
        jnp.sum(z * z, axis=-1, keepdims=True), COS_EPS_SQ))
    s = (jnp.sum(pn[0:batch, :] * zn[batch:2 * batch, :]) +
         jnp.sum(pn[batch:2 * batch, :] * zn[0:batch, :]))
    loss = (4.0 * batch - 2.0 * s) * (1.0 / batch)     # (loss01 + loss02).mean()

    # ---- single lane-dense, 128-aligned output slab (unmasked writeback)
    out_ref[:, OUT_PRE:OUT_MW] = pre
    out_ref[:, OUT_MW:OUT_MC] = fused[:, FUSED_MW:FUSED_H]     # mean over w
    out_ref[:, OUT_MC:OUT_LOSS] = fused[:, FUSED_MC:FUSED_W]   # mean over C (+pad)
    out_ref[:, OUT_LOSS:OUT_W] = jnp.broadcast_to(loss, (rows, OUT_W - OUT_LOSS))


# -----------------------------------------------------------------------------
# Forward wrapper: one pallas_call + zero-FLOP output reconstruction
# -----------------------------------------------------------------------------
def wave_byol_forward(folded, x01, x02):
    B = x01.shape[0]
    L = x01.shape[-1]
    lens, hh, ww = trunk_dims(L)
    l3 = lens[-1]
    C = EFF_FEAT
    R = max(8, _rup(2 * B, 8))                 # sublane-aligned row count

    # x01 and x02 stacked into one batch (target trunk == online trunk since
    # the target networks are fresh deepcopies in this forward).
    x = jnp.concatenate([x01, x02], axis=0).reshape(2 * B, -1).astype(jnp.float32)
    k1 = folded["m1"].shape[0]                 # padded waveform lane width
    x_pad = jnp.zeros((R, k1), jnp.float32).at[:2 * B, :x.shape[1]].set(x)

    inputs = (x_pad, folded["m1"], folded["m2"], folded["m3"], folded["menc"],
              folded["wfused"], folded["pw2"], folded["qw1"], folded["qw2"],
              folded["pslab"])

    out = pl.pallas_call(
        functools.partial(_wave_byol_kernel, batch=B, rows=R),
        out_shape=jax.ShapeDtypeStruct((R, OUT_W), jnp.float32),
        grid=(1,),
        in_specs=[pl.BlockSpec(a.shape, lambda i: (0, 0)) for a in inputs],
        out_specs=pl.BlockSpec((R, OUT_W), lambda i: (0, 0)),
        compiler_params=pltpu.CompilerParams(dimension_semantics=("arbitrary",)),
    )(*inputs)

    real = out[:2 * B]
    pre3 = real[:, OUT_PRE:OUT_PRE + PRE_HIDDEN * l3].reshape(2 * B, PRE_HIDDEN, l3)
    m_w = real[:, OUT_MW:OUT_MW + C * hh]
    m_c = real[:, OUT_MC:OUT_MC + hh * ww]
    loss = out[0, OUT_LOSS]

    online_x01_pre, online_x02_pre = pre3[:B], pre3[B:]

    # online pooled output: permute-then-pool == broadcast of mean-over-w values
    mw3 = jnp.transpose(m_w.reshape(2 * B, C, hh), (0, 2, 1))          # (2B, h, C)
    online_pooled = jnp.broadcast_to(
        mw3[:, :, None, :, None],
        (2 * B, hh, POOL_OUT[1] // hh, C, POOL_OUT[2] // C),
    ).reshape(2 * B, POOL_OUT[0], POOL_OUT[1], POOL_OUT[2])

    # target pooled output: pool-then-permute == broadcast of mean-over-C values
    mc3 = m_c.reshape(2 * B, hh, ww)
    target_pooled = jnp.broadcast_to(
        mc3[:, :, None, :, None],
        (2 * B, hh, POOL_OUT[1] // hh, ww, POOL_OUT[2] // ww),
    ).reshape(2 * B, POOL_OUT[0], POOL_OUT[1], POOL_OUT[2])

    online_representation = [(online_x01_pre, online_x02_pre),
                             (online_pooled[:B], online_pooled[B:])]
    # target pre/encoder nets are deepcopies of the online ones => same values
    target_representation = [(online_x01_pre, online_x02_pre),
                             (target_pooled[:B], target_pooled[B:])]
    return online_representation, target_representation, loss


# -----------------------------------------------------------------------------
# Deterministic parameter init (shapes follow the module's __init__)
# -----------------------------------------------------------------------------
def init_params(key):
    keys = iter(jax.random.split(key, 32))

    def w(shape, scale=0.05):
        return scale * jax.random.normal(next(keys), shape, jnp.float32)

    pre = []
    cin = 1
    for k in PRE_FILTER_SIZES:
        pre.append((w((PRE_HIDDEN, cin, k)), w((PRE_HIDDEN,), 0.01)))
        cin = PRE_HIDDEN

    enc = {
        "conv1x1_w": w((3, 1, 1, 1)),
        "conv1x1_b": w((3,), 0.01),
        "stem_w": w((EFF_FEAT, 3, 3, 3)),
        "stem_b": w((EFF_FEAT,), 0.01),
    }

    def mlp(din, dh, dout):
        return {
            "w1": w((din, dh), 0.02),
            "b1": w((dh,), 0.01),
            "gamma": jnp.ones((dh,), jnp.float32),
            "beta": jnp.zeros((dh,), jnp.float32),
            "w2": w((dh, dout), 0.05),
            "b2": w((dout,), 0.01),
        }

    return {
        "pre": pre,
        "enc": enc,
        "proj": mlp(DIMENSION, HIDDEN_SIZE, PROJECTION_SIZE),
        "pred": mlp(PROJECTION_SIZE, HIDDEN_SIZE, PROJECTION_SIZE),
    }


# -----------------------------------------------------------------------------
if __name__ == "__main__":
    key = jax.random.PRNGKey(0)
    pkey, k1, k2 = jax.random.split(key, 3)
    params = init_params(pkey)

    B, L = 2, 160
    x01 = jax.random.normal(k1, (B, 1, L), jnp.float32)
    x02 = jax.random.normal(k2, (B, 1, L), jnp.float32)

    # parameter folding runs ONCE (per parameter update), outside the hot path
    folded = prepare_params(params, L)

    fwd = jax.jit(wave_byol_forward)
    online_rep, target_rep, loss = fwd(folded, x01, x02)
    jax.block_until_ready(loss)

    # sanity checks on shapes implied by the forward pass
    assert online_rep[0][0].shape == (B, PRE_HIDDEN, 8)
    assert online_rep[1][0].shape == (B,) + POOL_OUT
    assert target_rep[1][0].shape == (B,) + POOL_OUT
    assert loss.shape == ()
    assert bool(jnp.isfinite(loss))

    print("KERNEL_OK")
</pallas_src>

<mosaic_0001>
module attributes {stable_mosaic.version = 11 : i64} {
  func.func @_wave_byol_kernel(%arg0: i32, %arg1: memref<8x256xf32, #tpu.memory_space<vmem>>, %arg2: memref<256x256xbf16, #tpu.memory_space<vmem>>, %arg3: memref<256x128xbf16, #tpu.memory_space<vmem>>, %arg4: memref<128x128xbf16, #tpu.memory_space<vmem>>, %arg5: memref<128x512xbf16, #tpu.memory_space<vmem>>, %arg6: memref<512x384xbf16, #tpu.memory_space<vmem>>, %arg7: memref<128x64xbf16, #tpu.memory_space<vmem>>, %arg8: memref<64x64xbf16, #tpu.memory_space<vmem>>, %arg9: memref<64x32xbf16, #tpu.memory_space<vmem>>, %arg10: memref<8x512xf32, #tpu.memory_space<vmem>>, %arg11: memref<8x512xf32, #tpu.memory_space<vmem>>) attributes {dimension_semantics = [#tpu.dimension_semantics<arbitrary>], iteration_bounds = array<i64: 1>, scalar_prefetch = 0 : i64, scratch_operands = 0 : i64, tpu.core_type = #tpu.core_type<tc>, window_params = [{pipeline_mode = #tpu.pipeline_mode<synchronous>, transform_indices = @transform_0, window_bounds = array<i64: 8, 256>}, {pipeline_mode = #tpu.pipeline_mode<synchronous>, transform_indices = @transform_1, window_bounds = array<i64: 256, 256>}, {pipeline_mode = #tpu.pipeline_mode<synchronous>, transform_indices = @transform_2, window_bounds = array<i64: 256, 128>}, {pipeline_mode = #tpu.pipeline_mode<synchronous>, transform_indices = @transform_3, window_bounds = array<i64: 128, 128>}, {pipeline_mode = #tpu.pipeline_mode<synchronous>, transform_indices = @transform_4, window_bounds = array<i64: 128, 512>}, {pipeline_mode = #tpu.pipeline_mode<synchronous>, transform_indices = @transform_5, window_bounds = array<i64: 512, 384>}, {pipeline_mode = #tpu.pipeline_mode<synchronous>, transform_indices = @transform_6, window_bounds = array<i64: 128, 64>}, {pipeline_mode = #tpu.pipeline_mode<synchronous>, transform_indices = @transform_7, window_bounds = array<i64: 64, 64>}, {pipeline_mode = #tpu.pipeline_mode<synchronous>, transform_indices = @transform_8, window_bounds = array<i64: 64, 32>}, {pipeline_mode = #tpu.pipeline_mode<synchronous>, transform_indices = @transform_9, window_bounds = array<i64: 8, 512>}, {pipeline_mode = #tpu.pipeline_mode<synchronous>, transform_indices = @transform_10, window_bounds = array<i64: 8, 512>}]} {
    %c0 = arith.constant 0 : index
    %c0_0 = arith.constant 0 : index
    %0 = vector.load %arg10[%c0, %c0_0] : memref<8x512xf32, #tpu.memory_space<vmem>>, vector<8x512xf32>
    %1 = tpu.iota {dimensions = array<i32: 0>} : vector<8x8xi32>
    %2 = tpu.iota {dimensions = array<i32: 1>} : vector<8x8xi32>
    %c2_i32 = arith.constant 2 : i32
    %3 = vector.broadcast %c2_i32 : i32 to vector<8x8xi32>
    %4 = arith.cmpi slt, %1, %3 : vector<8x8xi32>
    %c2_i32_1 = arith.constant 2 : i32
    %5 = vector.broadcast %c2_i32_1 : i32 to vector<8x8xi32>
    %6 = arith.cmpi slt, %2, %5 : vector<8x8xi32>
    %7 = arith.andi %4, %6 : vector<8x8xi1>
    %c2_i32_2 = arith.constant 2 : i32
    %8 = vector.broadcast %c2_i32_2 : i32 to vector<8x8xi32>
    %9 = arith.cmpi sge, %1, %8 : vector<8x8xi32>
    %c4_i32 = arith.constant 4 : i32
    %10 = vector.broadcast %c4_i32 : i32 to vector<8x8xi32>
    %11 = arith.cmpi slt, %1, %10 : vector<8x8xi32>
    %12 = arith.andi %9, %11 : vector<8x8xi1>
    %c2_i32_3 = arith.constant 2 : i32
    %13 = vector.broadcast %c2_i32_3 : i32 to vector<8x8xi32>
    %14 = arith.cmpi sge, %2, %13 : vector<8x8xi32>
    %15 = arith.andi %12, %14 : vector<8x8xi1>
    %c4_i32_4 = arith.constant 4 : i32
    %16 = vector.broadcast %c4_i32_4 : i32 to vector<8x8xi32>
    %17 = arith.cmpi slt, %2, %16 : vector<8x8xi32>
    %18 = arith.andi %15, %17 : vector<8x8xi1>
    %19 = arith.ori %7, %18 : vector<8x8xi1>
    %cst = arith.constant 5.000000e-01 : f32
    %cst_5 = arith.constant 0.000000e+00 : f32
    %20 = vector.broadcast %cst : f32 to vector<8x8xf32>
    %21 = vector.broadcast %cst_5 : f32 to vector<8x8xf32>
    %22 = arith.select %19, %20, %21 : vector<8x8xi1>, vector<8x8xf32>
    %c0_6 = arith.constant 0 : index
    %c0_7 = arith.constant 0 : index
    %23 = vector.load %arg1[%c0_6, %c0_7] : memref<8x256xf32, #tpu.memory_space<vmem>>, vector<8x256xf32>
    %c0_8 = arith.constant 0 : index
    %c0_9 = arith.constant 0 : index
    %24 = vector.load %arg2[%c0_8, %c0_9] : memref<256x256xbf16, #tpu.memory_space<vmem>>, vector<256x256xbf16>
    %25 = arith.truncf %23 : vector<8x256xf32> to vector<8x256xbf16>
    %cst_10 = arith.constant dense<0.000000e+00> : vector<8x256xf32>
    %26 = tpu.matmul %25, %24, %cst_10 {dimension_numbers = #tpu.dot_dimension_numbers<[1], [0], [0], [1], [0, 0, 1, 1], [], []>} : vector<8x256xbf16>, vector<256x256xbf16>, vector<8x256xf32> -> vector<8x256xf32>
    %27 = vector.extract_strided_slice %0 {offsets = [0, 0], sizes = [1, 256], strides = [1, 1]} : vector<8x512xf32> to vector<1x256xf32>
    %28 = vector.broadcast %27 : vector<1x256xf32> to vector<8x256xf32>
    %29 = arith.addf %26, %28 : vector<8x256xf32>
    %cst_11 = arith.constant 0.000000e+00 : f32
    %30 = vector.broadcast %cst_11 : f32 to vector<8x256xf32>
    %31 = arith.cmpf oge, %29, %30 : vector<8x256xf32>
    %cst_12 = arith.constant 0.00999999977 : f32
    %32 = vector.broadcast %cst_12 : f32 to vector<8x256xf32>
    %33 = arith.mulf %32, %29 : vector<8x256xf32>
    %34 = arith.select %31, %29, %33 : vector<8x256xi1>, vector<8x256xf32>
    %c0_13 = arith.constant 0 : index
    %c0_14 = arith.constant 0 : index
    %35 = vector.load %arg3[%c0_13, %c0_14] : memref<256x128xbf16, #tpu.memory_space<vmem>>, vector<256x128xbf16>
    %36 = arith.truncf %34 : vector<8x256xf32> to vector<8x256xbf16>
    %cst_15 = arith.constant dense<0.000000e+00> : vector<8x128xf32>
    %37 = tpu.matmul %36, %35, %cst_15 {dimension_numbers = #tpu.dot_dimension_numbers<[1], [0], [0], [1], [0, 0, 1, 1], [], []>} : vector<8x256xbf16>, vector<256x128xbf16>, vector<8x128xf32> -> vector<8x128xf32>
    %38 = vector.extract_strided_slice %0 {offsets = [1, 0], sizes = [1, 128], strides = [1, 1]} : vector<8x512xf32> to vector<1x128xf32>
    %39 = vector.broadcast %38 : vector<1x128xf32> to vector<8x128xf32>
    %40 = arith.addf %37, %39 : vector<8x128xf32>
    %cst_16 = arith.constant 0.000000e+00 : f32
    %41 = vector.broadcast %cst_16 : f32 to vector<8x128xf32>
    %42 = arith.cmpf oge, %40, %41 : vector<8x128xf32>
    %cst_17 = arith.constant 0.00999999977 : f32
    %43 = vector.broadcast %cst_17 : f32 to vector<8x128xf32>
    %44 = arith.mulf %43, %40 : vector<8x128xf32>
    %45 = arith.select %42, %40, %44 : vector<8x128xi1>, vector<8x128xf32>
    %c0_18 = arith.constant 0 : index
    %c0_19 = arith.constant 0 : index
    %46 = vector.load %arg4[%c0_18, %c0_19] : memref<128x128xbf16, #tpu.memory_space<vmem>>, vector<128x128xbf16>
    %47 = arith.truncf %45 : vector<8x128xf32> to vector<8x128xbf16>
    %cst_20 = arith.constant dense<0.000000e+00> : vector<8x128xf32>
    %48 = tpu.matmul %47, %46, %cst_20 {dimension_numbers = #tpu.dot_dimension_numbers<[1], [0], [0], [1], [0, 0, 1, 1], [], []>} : vector<8x128xbf16>, vector<128x128xbf16>, vector<8x128xf32> -> vector<8x128xf32>
    %49 = vector.extract_strided_slice %0 {offsets = [2, 0], sizes = [1, 128], strides = [1, 1]} : vector<8x512xf32> to vector<1x128xf32>
    %50 = vector.broadcast %49 : vector<1x128xf32> to vector<8x128xf32>
    %51 = arith.addf %48, %50 : vector<8x128xf32>
    %cst_21 = arith.constant 0.000000e+00 : f32
    %52 = vector.broadcast %cst_21 : f32 to vector<8x128xf32>
    %53 = arith.cmpf oge, %51, %52 : vector<8x128xf32>
    %cst_22 = arith.constant 0.00999999977 : f32
    %54 = vector.broadcast %cst_22 : f32 to vector<8x128xf32>
    %55 = arith.mulf %54, %51 : vector<8x128xf32>
    %56 = arith.select %53, %51, %55 : vector<8x128xi1>, vector<8x128xf32>
    %c0_23 = arith.constant 0 : index
    %c0_24 = arith.constant 0 : index
    %57 = vector.load %arg5[%c0_23, %c0_24] : memref<128x512xbf16, #tpu.memory_space<vmem>>, vector<128x512xbf16>
    %58 = arith.truncf %56 : vector<8x128xf32> to vector<8x128xbf16>
    %cst_25 = arith.constant dense<0.000000e+00> : vector<8x512xf32>
    %59 = tpu.matmul %58, %57, %cst_25 {dimension_numbers = #tpu.dot_dimension_numbers<[1], [0], [0], [1], [0, 0, 1, 1], [], []>} : vector<8x128xbf16>, vector<128x512xbf16>, vector<8x512xf32> -> vector<8x512xf32>
    %60 = vector.extract_strided_slice %0 {offsets = [3, 0], sizes = [1, 512], strides = [1, 1]} : vector<8x512xf32> to vector<1x512xf32>
    %61 = vector.broadcast %60 : vector<1x512xf32> to vector<8x512xf32>
    %62 = arith.addf %59, %61 : vector<8x512xf32>
    %63 = arith.negf %62 : vector<8x512xf32>
    %64 = math.exp %63 : vector<8x512xf32>
    %cst_26 = arith.constant 1.000000e+00 : f32
    %65 = vector.broadcast %cst_26 : f32 to vector<8x512xf32>
    %66 = arith.addf %65, %64 : vector<8x512xf32>
    %67 = arith.divf %65, %66 : vector<8x512xf32>
    %68 = arith.mulf %62, %67 : vector<8x512xf32>
    %c0_27 = arith.constant 0 : index
    %c0_28 = arith.constant 0 : index
    %69 = vector.load %arg6[%c0_27, %c0_28] : memref<512x384xbf16, #tpu.memory_space<vmem>>, vector<512x384xbf16>
    %70 = arith.truncf %68 : vector<8x512xf32> to vector<8x512xbf16>
    %cst_29 = arith.constant dense<0.000000e+00> : vector<8x384xf32>
    %71 = tpu.matmul %70, %69, %cst_29 {dimension_numbers = #tpu.dot_dimension_numbers<[1], [0], [0], [1], [0, 0, 1, 1], [], []>} : vector<8x512xbf16>, vector<512x384xbf16>, vector<8x384xf32> -> vector<8x384xf32>
    %72 = vector.extract_strided_slice %71 {offsets = [0, 128], sizes = [8, 128], strides = [1, 1]} : vector<8x384xf32> to vector<8x128xf32>
    %73 = vector.extract_strided_slice %0 {offsets = [4, 0], sizes = [1, 128], strides = [1, 1]} : vector<8x512xf32> to vector<1x128xf32>
    %74 = vector.broadcast %73 : vector<1x128xf32> to vector<8x128xf32>
    %75 = arith.addf %72, %74 : vector<8x128xf32>
    %76 = vector.extract_strided_slice %0 {offsets = [4, 128], sizes = [1, 128], strides = [1, 1]} : vector<8x512xf32> to vector<1x128xf32>
    %77 = vector.extract_strided_slice %0 {offsets = [4, 256], sizes = [1, 128], strides = [1, 1]} : vector<8x512xf32> to vector<1x128xf32>
    %cst_30 = arith.constant dense<0.000000e+00> : vector<8x128xf32>
    %78 = tpu.matmul %22, %75, %cst_30 {dimension_numbers = #tpu.dot_dimension_numbers<[1], [0], [0], [1], [0, 0, 1, 1], [], []>} : vector<8x8xf32>, vector<8x128xf32>, vector<8x128xf32> -> vector<8x128xf32>
    %79 = arith.subf %75, %78 : vector<8x128xf32>
    %80 = arith.mulf %79, %79 : vector<8x128xf32>
    %cst_31 = arith.constant dense<0.000000e+00> : vector<8x128xf32>
    %81 = tpu.matmul %22, %80, %cst_31 {dimension_numbers = #tpu.dot_dimension_numbers<[1], [0], [0], [1], [0, 0, 1, 1], [], []>} : vector<8x8xf32>, vector<8x128xf32>, vector<8x128xf32> -> vector<8x128xf32>
    %cst_32 = arith.constant 9.99999974E-6 : f32
    %82 = vector.broadcast %cst_32 : f32 to vector<8x128xf32>
    %83 = arith.addf %81, %82 : vector<8x128xf32>
    %84 = math.rsqrt %83 : vector<8x128xf32>
    %85 = arith.mulf %79, %84 : vector<8x128xf32>
    %86 = vector.broadcast %76 : vector<1x128xf32> to vector<8x128xf32>
    %87 = arith.mulf %85, %86 : vector<8x128xf32>
    %88 = vector.broadcast %77 : vector<1x128xf32> to vector<8x128xf32>
    %89 = arith.addf %87, %88 : vector<8x128xf32>
    %cst_33 = arith.constant 0.000000e+00 : f32
    %90 = vector.broadcast %cst_33 : f32 to vector<8x128xf32>
    %91 = arith.maximumf %89, %90 : vector<8x128xf32>
    %c0_34 = arith.constant 0 : index
    %c0_35 = arith.constant 0 : index
    %92 = vector.load %arg7[%c0_34, %c0_35] : memref<128x64xbf16, #tpu.memory_space<vmem>>, vector<128x64xbf16>
    %93 = arith.truncf %91 : vector<8x128xf32> to vector<8x128xbf16>
    %cst_36 = arith.constant dense<0.000000e+00> : vector<8x64xf32>
    %94 = tpu.matmul %93, %92, %cst_36 {dimension_numbers = #tpu.dot_dimension_numbers<[1], [0], [0], [1], [0, 0, 1, 1], [], []>} : vector<8x128xbf16>, vector<128x64xbf16>, vector<8x64xf32> -> vector<8x64xf32>
    %95 = vector.extract_strided_slice %0 {offsets = [4, 384], sizes = [1, 64], strides = [1, 1]} : vector<8x512xf32> to vector<1x64xf32>
    %96 = vector.broadcast %95 : vector<1x64xf32> to vector<8x64xf32>
    %97 = arith.addf %94, %96 : vector<8x64xf32>
    %c0_37 = arith.constant 0 : index
    %c0_38 = arith.constant 0 : index
    %98 = vector.load %arg8[%c0_37, %c0_38] : memref<64x64xbf16, #tpu.memory_space<vmem>>, vector<64x64xbf16>
    %99 = arith.truncf %97 : vector<8x64xf32> to vector<8x64xbf16>
    %cst_39 = arith.constant dense<0.000000e+00> : vector<8x64xf32>
    %100 = tpu.matmul %99, %98, %cst_39 {dimension_numbers = #tpu.dot_dimension_numbers<[1], [0], [0], [1], [0, 0, 1, 1], [], []>} : vector<8x64xbf16>, vector<64x64xbf16>, vector<8x64xf32> -> vector<8x64xf32>
    %101 = vector.extract_strided_slice %0 {offsets = [5, 0], sizes = [1, 64], strides = [1, 1]} : vector<8x512xf32> to vector<1x64xf32>
    %102 = vector.broadcast %101 : vector<1x64xf32> to vector<8x64xf32>
    %103 = arith.addf %100, %102 : vector<8x64xf32>
    %104 = vector.extract_strided_slice %0 {offsets = [5, 64], sizes = [1, 64], strides = [1, 1]} : vector<8x512xf32> to vector<1x64xf32>
    %105 = vector.extract_strided_slice %0 {offsets = [5, 128], sizes = [1, 64], strides = [1, 1]} : vector<8x512xf32> to vector<1x64xf32>
    %cst_40 = arith.constant dense<0.000000e+00> : vector<8x64xf32>
    %106 = tpu.matmul %22, %103, %cst_40 {dimension_numbers = #tpu.dot_dimension_numbers<[1], [0], [0], [1], [0, 0, 1, 1], [], []>} : vector<8x8xf32>, vector<8x64xf32>, vector<8x64xf32> -> vector<8x64xf32>
    %107 = arith.subf %103, %106 : vector<8x64xf32>
    %108 = arith.mulf %107, %107 : vector<8x64xf32>
    %cst_41 = arith.constant dense<0.000000e+00> : vector<8x64xf32>
    %109 = tpu.matmul %22, %108, %cst_41 {dimension_numbers = #tpu.dot_dimension_numbers<[1], [0], [0], [1], [0, 0, 1, 1], [], []>} : vector<8x8xf32>, vector<8x64xf32>, vector<8x64xf32> -> vector<8x64xf32>
    %cst_42 = arith.constant 9.99999974E-6 : f32
    %110 = vector.broadcast %cst_42 : f32 to vector<8x64xf32>
    %111 = arith.addf %109, %110 : vector<8x64xf32>
    %112 = math.rsqrt %111 : vector<8x64xf32>
    %113 = arith.mulf %107, %112 : vector<8x64xf32>
    %114 = vector.broadcast %104 : vector<1x64xf32> to vector<8x64xf32>
    %115 = arith.mulf %113, %114 : vector<8x64xf32>
    %116 = vector.broadcast %105 : vector<1x64xf32> to vector<8x64xf32>
    %117 = arith.addf %115, %116 : vector<8x64xf32>
    %cst_43 = arith.constant 0.000000e+00 : f32
    %118 = vector.broadcast %cst_43 : f32 to vector<8x64xf32>
    %119 = arith.maximumf %117, %118 : vector<8x64xf32>
    %c0_44 = arith.constant 0 : index
    %c0_45 = arith.constant 0 : index
    %120 = vector.load %arg9[%c0_44, %c0_45] : memref<64x32xbf16, #tpu.memory_space<vmem>>, vector<64x32xbf16>
    %121 = arith.truncf %119 : vector<8x64xf32> to vector<8x64xbf16>
    %cst_46 = arith.constant dense<0.000000e+00> : vector<8x32xf32>
    %122 = tpu.matmul %121, %120, %cst_46 {dimension_numbers = #tpu.dot_dimension_numbers<[1], [0], [0], [1], [0, 0, 1, 1], [], []>} : vector<8x64xbf16>, vector<64x32xbf16>, vector<8x32xf32> -> vector<8x32xf32>
    %123 = vector.extract_strided_slice %0 {offsets = [5, 192], sizes = [1, 32], strides = [1, 1]} : vector<8x512xf32> to vector<1x32xf32>
    %124 = vector.broadcast %123 : vector<1x32xf32> to vector<8x32xf32>
    %125 = arith.addf %122, %124 : vector<8x32xf32>
    %126 = vector.extract_strided_slice %97 {offsets = [0, 32], sizes = [8, 32], strides = [1, 1]} : vector<8x64xf32> to vector<8x32xf32>
    %127 = arith.mulf %125, %125 : vector<8x32xf32>
    %cst_47 = arith.constant dense<0.000000e+00> : vector<8xf32>
    %128 = vector.multi_reduction <add>, %127, %cst_47 [1] : vector<8x32xf32> to vector<8xf32>
    %129 = vector.shape_cast %128 : vector<8xf32> to vector<8x1xf32>
    %cst_48 = arith.constant 1.000000e-24 : f32
    %130 = vector.broadcast %cst_48 : f32 to vector<8x1xf32>
    %131 = arith.maximumf %129, %130 : vector<8x1xf32>
    %132 = math.rsqrt %131 : vector<8x1xf32>
    %133 = vector.broadcast %132 : vector<8x1xf32> to vector<8x32xf32>
    %134 = arith.mulf %125, %133 : vector<8x32xf32>
    %135 = arith.mulf %126, %126 : vector<8x32xf32>
    %cst_49 = arith.constant dense<0.000000e+00> : vector<8xf32>
    %136 = vector.multi_reduction <add>, %135, %cst_49 [1] : vector<8x32xf32> to vector<8xf32>
    %137 = vector.shape_cast %136 : vector<8xf32> to vector<8x1xf32>
    %cst_50 = arith.constant 1.000000e-24 : f32
    %138 = vector.broadcast %cst_50 : f32 to vector<8x1xf32>
    %139 = arith.maximumf %137, %138 : vector<8x1xf32>
    %140 = math.rsqrt %139 : vector<8x1xf32>
    %141 = vector.broadcast %140 : vector<8x1xf32> to vector<8x32xf32>
    %142 = arith.mulf %126, %141 : vector<8x32xf32>
    %143 = vector.extract_strided_slice %134 {offsets = [0, 0], sizes = [2, 32], strides = [1, 1]} : vector<8x32xf32> to vector<2x32xf32>
    %144 = vector.extract_strided_slice %142 {offsets = [2, 0], sizes = [2, 32], strides = [1, 1]} : vector<8x32xf32> to vector<2x32xf32>
    %145 = arith.mulf %143, %144 : vector<2x32xf32>
    %146 = vector.shape_cast %145 : vector<2x32xf32> to vector<1x2x32xf32>
    %cst_51 = arith.constant dense<0.000000e+00> : vector<1xf32>
    %147 = vector.multi_reduction <add>, %146, %cst_51 [1, 2] : vector<1x2x32xf32> to vector<1xf32>
    %148 = vector.shape_cast %147 : vector<1xf32> to vector<1x1x1xf32>
    %149 = vector.extract %148[0, 0, 0] : f32 from vector<1x1x1xf32>
    %150 = vector.extract_strided_slice %134 {offsets = [2, 0], sizes = [2, 32], strides = [1, 1]} : vector<8x32xf32> to vector<2x32xf32>
    %151 = vector.extract_strided_slice %142 {offsets = [0, 0], sizes = [2, 32], strides = [1, 1]} : vector<8x32xf32> to vector<2x32xf32>
    %152 = arith.mulf %150, %151 : vector<2x32xf32>
    %153 = vector.shape_cast %152 : vector<2x32xf32> to vector<1x2x32xf32>
    %cst_52 = arith.constant dense<0.000000e+00> : vector<1xf32>
    %154 = vector.multi_reduction <add>, %153, %cst_52 [1, 2] : vector<1x2x32xf32> to vector<1xf32>
    %155 = vector.shape_cast %154 : vector<1xf32> to vector<1x1x1xf32>
    %156 = vector.extract %155[0, 0, 0] : f32 from vector<1x1x1xf32>
    %157 = arith.addf %149, %156 : f32
    %cst_53 = arith.constant 2.000000e+00 : f32
    %158 = arith.mulf %cst_53, %157 : f32
    %cst_54 = arith.constant 8.000000e+00 : f32
    %159 = arith.subf %cst_54, %158 : f32
    %cst_55 = arith.constant 5.000000e-01 : f32
    %160 = arith.mulf %159, %cst_55 : f32
    %c0_56 = arith.constant 0 : index
    %c0_57 = arith.constant 0 : index
    %161 = vector.load %arg11[%c0_56, %c0_57] : memref<8x512xf32, #tpu.memory_space<vmem>>, vector<8x128xf32>
    tpu.vector_store %arg11[%c0_56, %c0_57], %56 {strides = array<i32>} : memref<8x512xf32, #tpu.memory_space<vmem>>, vector<8x128xf32>,
    %162 = vector.extract_strided_slice %71 {offsets = [0, 0], sizes = [8, 128], strides = [1, 1]} : vector<8x384xf32> to vector<8x128xf32>
    %c0_58 = arith.constant 0 : index
    %c128 = arith.constant 128 : index
    %163 = vector.load %arg11[%c0_58, %c128] : memref<8x512xf32, #tpu.memory_space<vmem>>, vector<8x128xf32>
    tpu.vector_store %arg11[%c0_58, %c128], %162 {strides = array<i32>} : memref<8x512xf32, #tpu.memory_space<vmem>>, vector<8x128xf32>,
    %164 = vector.extract_strided_slice %71 {offsets = [0, 256], sizes = [8, 128], strides = [1, 1]} : vector<8x384xf32> to vector<8x128xf32>
    %c0_59 = arith.constant 0 : index
    %c256 = arith.constant 256 : index
    %165 = vector.load %arg11[%c0_59, %c256] : memref<8x512xf32, #tpu.memory_space<vmem>>, vector<8x128xf32>
    tpu.vector_store %arg11[%c0_59, %c256], %164 {strides = array<i32>} : memref<8x512xf32, #tpu.memory_space<vmem>>, vector<8x128xf32>,
    %166 = vector.broadcast %160 : f32 to vector<8x128xf32>
    %c0_60 = arith.constant 0 : index
    %c384 = arith.constant 384 : index
    %167 = vector.load %arg11[%c0_60, %c384] : memref<8x512xf32, #tpu.memory_space<vmem>>, vector<8x128xf32>
    tpu.vector_store %arg11[%c0_60, %c384], %166 {strides = array<i32>} : memref<8x512xf32, #tpu.memory_space<vmem>>, vector<8x128xf32>,
    return
  }
  func.func @transform_0(%arg0: i32) -> (i32, i32) {
    %c0_i32 = arith.constant 0 : i32
    %c0_i32_0 = arith.constant 0 : i32
    %c0_i32_1 = arith.constant 0 : i32
    return %c0_i32, %c0_i32_0 : i32, i32
  }
  func.func @transform_1(%arg0: i32) -> (i32, i32) {
    %c0_i32 = arith.constant 0 : i32
    %c0_i32_0 = arith.constant 0 : i32
    %c0_i32_1 = arith.constant 0 : i32
    return %c0_i32, %c0_i32_0 : i32, i32
  }
  func.func @transform_2(%arg0: i32) -> (i32, i32) {
    %c0_i32 = arith.constant 0 : i32
    %c0_i32_0 = arith.constant 0 : i32
    %c0_i32_1 = arith.constant 0 : i32
    return %c0_i32, %c0_i32_0 : i32, i32
  }
  func.func @transform_3(%arg0: i32) -> (i32, i32) {
    %c0_i32 = arith.constant 0 : i32
    %c0_i32_0 = arith.constant 0 : i32
    %c0_i32_1 = arith.constant 0 : i32
    return %c0_i32, %c0_i32_0 : i32, i32
  }
  func.func @transform_4(%arg0: i32) -> (i32, i32) {
    %c0_i32 = arith.constant 0 : i32
    %c0_i32_0 = arith.constant 0 : i32
    %c0_i32_1 = arith.constant 0 : i32
    return %c0_i32, %c0_i32_0 : i32, i32
  }
  func.func @transform_5(%arg0: i32) -> (i32, i32) {
    %c0_i32 = arith.constant 0 : i32
    %c0_i32_0 = arith.constant 0 : i32
    %c0_i32_1 = arith.constant 0 : i32
    return %c0_i32, %c0_i32_0 : i32, i32
  }
  func.func @transform_6(%arg0: i32) -> (i32, i32) {
    %c0_i32 = arith.constant 0 : i32
    %c0_i32_0 = arith.constant 0 : i32
    %c0_i32_1 = arith.constant 0 : i32
    return %c0_i32, %c0_i32_0 : i32, i32
  }
  func.func @transform_7(%arg0: i32) -> (i32, i32) {
    %c0_i32 = arith.constant 0 : i32
    %c0_i32_0 = arith.constant 0 : i32
    %c0_i32_1 = arith.constant 0 : i32
    return %c0_i32, %c0_i32_0 : i32, i32
  }
  func.func @transform_8(%arg0: i32) -> (i32, i32) {
    %c0_i32 = arith.constant 0 : i32
    %c0_i32_0 = arith.constant 0 : i32
    %c0_i32_1 = arith.constant 0 : i32
    return %c0_i32, %c0_i32_0 : i32, i32
  }
  func.func @transform_9(%arg0: i32) -> (i32, i32) {
    %c0_i32 = arith.constant 0 : i32
    %c0_i32_0 = arith.constant 0 : i32
    %c0_i32_1 = arith.constant 0 : i32
    return %c0_i32, %c0_i32_0 : i32, i32
  }
  func.func @transform_10(%arg0: i32) -> (i32, i32) {
    %c0_i32 = arith.constant 0 : i32
    %c0_i32_0 = arith.constant 0 : i32
    %c0_i32_1 = arith.constant 0 : i32
    return %c0_i32, %c0_i32_0 : i32, i32
  }
}

</mosaic_0001>

<bundles_post_ra>
// kernel: wave_byol_forward.1
= control target key start
LH: loop header
LB: loop body
LE: loop exit
PB: predicated region body
PF: predicated region fallthrough
CT: control target
= control target key end

     0   :  { %15 = vsyncpa [#allocation3], 0  ;;  %s3595_s0 = inlined_call_operand.vmem [shape: f32[8,256], index: 0, kind: input, shape index: {}]   ;;  %s3596_s1 = inlined_call_operand.hbm [shape: bf16[256,256], index: 1, kind: input, shape index: {}]   ;;  %s3597_s2 = inlined_call_operand.vmem [shape: bf16[256,128], index: 2, kind: input, shape index: {}]   ;;  %s3598_s3 = inlined_call_operand.vmem [shape: bf16[128,128], index: 3, kind: input, shape index: {}]   ;;  %s3599_s4 = inlined_call_operand.hbm [shape: bf16[128,512], index: 4, kind: input, shape index: {}]   ;;  %s3600_s5 = inlined_call_operand.hbm [shape: bf16[512,384], index: 5, kind: input, shape index: {}]   ;;  %s3601_s6 = inlined_call_operand.vmem [shape: bf16[128,64], index: 6, kind: input, shape index: {}]   ;;  %s3602_s7 = inlined_call_operand.hbm [shape: bf16[64,64], index: 7, kind: input, shape index: {}]   ;;  %s3603_s8 = inlined_call_operand.vmem [shape: bf16[64,32], index: 8, kind: input, shape index: {}]   ;;  %s3604_s9 = inlined_call_operand.hbm [shape: f32[8,512], index: 9, kind: input, shape index: {}]   ;;  %s3605_s10 = inlined_call_operand.vmem [shape: f32[8,512], index: 10, kind: output, shape index: {}]  }
   0x1   :  { %16 = vsyncpa [#allocation5], 0 }
   0x2   :  { %17 = vsyncpa [#allocation8], 0  ;;  %s3257_s13 = smov [#allocation4]  }
   0x3   :  { %s41_s14 = sshll.u32 %s3257_s13, 4  ;;  %s42_s14 = int_to_ptr.vmem [resolvable:$true] %s41_s14 }
   0x4   :  { %s3159_s15 = scalar_lea.vmem %s42_s14, 4096  ;;  %p3164_p1 = scmp.lt.s32.totalorder %s42_s14, %s42_s14 }
   0x5   :  { %p3160_p0 = scmp.ne.s32.totalorder %s42_s14, %s3159_s15  ;;  %p3165_p2 = scmp.lt.s32.totalorder %s3159_s15, %s3159_s15 }
   0x7   :  { %p3166_p3 = por %p3165_p2, %p3164_p1 }
   0x9   :  { %p3167_p4 = pnand %p3166_p3, %p3160_p0 }
   0xb   :  { %3170 = shalt.err (!%p3167_p4)
}
   0xc   :  { %s3258_s16 = smov 256   ;;  %s3259_s17 = smov 16  }
   0xd   :  { %47 = dma.hbm_to_vmem [thread:$0]  %s3599_s4, 4096, %s42_s14, [#allocation5], %s3258_s16, %s3258_s16, %s3259_s17  }
   0xe   :  { %s3260_s20 = smov [#allocation7]  }
   0xf   :  { %s67_s21 = sshll.u32 %s3260_s20, 4  ;;  %s68_s21 = int_to_ptr.vmem [resolvable:$true] %s67_s21 }
  0x10   :  { %s3179_s22 = scalar_lea.vmem %s68_s21, 512  ;;  %p3184_p6 = scmp.lt.s32.totalorder %s68_s21, %s68_s21 }
  0x11   :  { %p3180_p5 = scmp.ne.s32.totalorder %s68_s21, %s3179_s22  ;;  %p3185_p7 = scmp.lt.s32.totalorder %s3179_s22, %s3179_s22 }
  0x13   :  { %p3186_p8 = por %p3185_p7, %p3184_p6 }
  0x15   :  { %p3187_p9 = pnand %p3186_p8, %p3180_p5 }
  0x17   :  { %3190 = shalt.err (!%p3187_p9)
}
  0x18   :  { %s3261_s23 = smov 64   ;;  %s3262_s24 = smov 4  }
  0x19   :  { %73 = dma.hbm_to_vmem [thread:$0]  %s3602_s7, 512, %s68_s21, [#allocation8], %s3261_s23, %s3261_s23, %s3262_s24  }
  0x1a   :  { %s3263_s27 = smov [#allocation2]  }
  0x1b   :  { %s25_s4 = sshll.u32 %s3263_s27, 4  ;;  %s26_s4 = int_to_ptr.vmem [resolvable:$true] %s25_s4 }
  0x1c   :  { %s3199_s28 = scalar_lea.vmem %s26_s4, 4096  ;;  %p3204_p11 = scmp.lt.s32.totalorder %s26_s4, %s26_s4 }
  0x1d   :  { %p3200_p10 = scmp.ne.s32.totalorder %s26_s4, %s3199_s28  ;;  %p3205_p12 = scmp.lt.s32.totalorder %s3199_s28, %s3199_s28 }
  0x1f   :  { %p3206_p13 = por %p3205_p12, %p3204_p11 }
  0x21   :  { %p3207_p0 = pnand %p3206_p13, %p3200_p10 }
  0x23   :  { %3210 = shalt.err (!%p3207_p0)
}
  0x24   :  { %s3264_s29 = smov 128   ;;  %s3265_s30 = smov 8  }
  0x25   :  { %31 = dma.hbm_to_vmem [thread:$0]  %s3596_s1, 4096, %s26_s4, [#allocation3], %s3264_s29, %s3264_s29, %s3265_s30  }
  0x26   :  { %s3266_s13 = smov [#allocation6]  }
  0x27   :  { %s53_s14 = sshll.u32 %s3266_s13, 4  ;;  %s54_s14 = int_to_ptr.vmem [resolvable:$true] %s53_s14 }
  0x28   :  { %s3219_s7 = scalar_lea.vmem %s54_s14, 12288  ;;  %p3224_p2 = scmp.lt.s32.totalorder %s54_s14, %s54_s14 }
  0x29   :  { %p3220_p1 = scmp.ne.s32.totalorder %s54_s14, %s3219_s7  ;;  %p3225_p3 = scmp.lt.s32.totalorder %s3219_s7, %s3219_s7 }
  0x2b   :  { %p3226_p4 = por %p3225_p3, %p3224_p2 }
  0x2d   :  { %p3227_p5 = pnand %p3226_p4, %p3220_p1 }
  0x2f   :  { %3230 = shalt.err (!%p3227_p5)
}
  0x30   :  { %s3267_s15 = smov 192   ;;  %s3268_s16 = smov 12  }
  0x31   :  { %59 = dma.hbm_to_vmem [thread:$0]  %s3600_s5, 12288, %s54_s14, [#allocation5], %s3267_s15, %s3267_s15, %s3268_s16  }
  0x32   :  { %s3269_s19 = smov [#allocation9]  }
  0x33   :  { %s82_s20 = sshll.u32 %s3269_s19, 4  ;;  %s83_s20 = int_to_ptr.vmem [resolvable:$true] %s82_s20 }
  0x34   :  { %s3239_s1 = scalar_lea.vmem %s83_s20, 512  ;;  %p3244_p7 = scmp.lt.s32.totalorder %s83_s20, %s83_s20 }
  0x35   :  { %p3240_p6 = scmp.ne.s32.totalorder %s83_s20, %s3239_s1  ;;  %p3245_p8 = scmp.lt.s32.totalorder %s3239_s1, %s3239_s1 }
  0x37   :  { %p3246_p9 = por %p3245_p8, %p3244_p7 }
  0x39   :  { %p3247_p10 = pnand %p3246_p9, %p3240_p6 }
  0x3b   :  { %3250 = shalt.err (!%p3247_p10)
}
  0x3c   :  { %85 = dma.hbm_to_vmem [thread:$0]  %s3604_s9, 512, %s83_s20, [#allocation8]  }
  0x3d   :  { %3251 = dma.done.wait [#allocation3], 4096  }
  0x3e   :  { %3252 = vsyncadd [#allocation3], 4294963200 }
  0x3f   :  { %3253 = dma.done.wait [#allocation5], 16384  }
  0x40   :  { %3254 = vsyncadd [#allocation5], 4294950912 }
  0x41   :  { %3255 = dma.done.wait [#allocation8], 1024  }
  0x42   :  { %3256 = vsyncadd [#allocation8], 4294966272  ;;  %v2863_v0 = vld [vmem:[#allocation2 + $0x74] ss:$8 sps:$4 sm:$0xff]   ;;  %v2865_v1 = vld [vmem:[#allocation2 + $0x70] ss:$8 sps:$4 sm:$0xff]   ;;  %v106_v53 = vlaneseq }
  0x43   :  { %326 = vmatprep.subr.bf16.mxu0 %v2863_v0  ;;  %v2866_v2 = vld [vmem:[#allocation2 + $0x64] ss:$8 sps:$4 sm:$0xff]   ;;  %v2868_v3 = vld [vmem:[#allocation2 + $0x60] ss:$8 sps:$4 sm:$0xff]   ;;  %v2869_v4 = vld [vmem:[#allocation2 + $0x54] ss:$8 sps:$4 sm:$0xff]  }
  0x44   :  { %327 = vmatpush1.bf16.msra.mxu0 %v2865_v1  ;;  %v2871_v5 = vld [vmem:[#allocation2 + $0x50] ss:$8 sps:$4 sm:$0xff]   ;;  %v2872_v6 = vld [vmem:[#allocation2 + $0x44] ss:$8 sps:$4 sm:$0xff]   ;;  %v2874_v7 = vld [vmem:[#allocation2 + $0x40] ss:$8 sps:$4 sm:$0xff]  }
  0x45   :  { %328 = vmatprep.subr.bf16.mxu0 %v2866_v2  ;;  %v2875_v8 = vld [vmem:[#allocation2 + $0x34] ss:$8 sps:$4 sm:$0xff]   ;;  %v2877_v9 = vld [vmem:[#allocation2 + $0x30] ss:$8 sps:$4 sm:$0xff]   ;;  %v2878_v10 = vld [vmem:[#allocation2 + $0x24] ss:$8 sps:$4 sm:$0xff]  }
  0x46   :  { %v2880_v11 = vld [vmem:[#allocation2 + $0x20] ss:$8 sps:$4 sm:$0xff]   ;;  %v2881_v12 = vld [vmem:[#allocation2 + $0x14] ss:$8 sps:$4 sm:$0xff]   ;;  %v2883_v13 = vld [vmem:[#allocation2 + $0x10] ss:$8 sps:$4 sm:$0xff]  }
  0x47   :  { %v123_v14 = vld [vmem:[%s3595_s0 + $0x8] sm:$0xff]  ;;  %v2911_v17 = vld [vmem:[%s3597_s2 + $0x78] sm:$0xff]   ;;  %v2913_v19 = vld [vmem:[%s3597_s2 + $0x70] sm:$0xff]   ;;  %v3270_v52 = vmov 0.0   ;;  %v3402_v54 = vshrl.u32 %v106_v53, 7  ;;  %vm3271_vm2 = vmmov 0  }
  0x48   :  { %329 = vmatpush1.bf16.msra.mxu0 %v2868_v3  ;;  %v2884_v15 = vld [vmem:[#allocation2 + $0x4] ss:$8 sps:$4 sm:$0xff]   ;;  %v157_v16 = vpack.c.bf16 %v123_v14, %v123_v14  ;;  %v2912_v18 = vld [vmem:[%s3597_s2 + $0x38] sm:$0xff]   ;;  %v2886_v20 = vld [vmem:[#allocation2] ss:$8 sps:$4 sm:$0xff]   ;;  %2656 = vmatprep.subr.bf16.mxu1 %v2911_v17 }
  0x49   :  { %330 = vmatprep.subr.bf16.mxu0 %v2869_v4  ;;  %2657 = vmatpush3.bf16.msra.mxu1 %v2912_v18  ;;  %v2914_v21 = vld [vmem:[%s3597_s2 + $0x30] sm:$0xff]   ;;  %v2915_v22 = vld [vmem:[%s3597_s2 + $0x68] sm:$0xff]   ;;  %v2917_v27 = vld [vmem:[%s3597_s2 + $0x60] sm:$0xff]   ;;  %v160_v55 = vsub.s32 0, %v3402_v54  ;;  %vm113_vm5 = vcmp.ge.s32.totalorder %v3402_v54, 2  ;;  %vm114_vm6 = vcmp.lt.s32.totalorder %v3402_v54, 4 }
  0x4a   :  { %358 = vmatprep.mubr.bf16.mxu0 %v157_v16  ;;  %2658 = vmatprep.subr.bf16.mxu1 %v2913_v19  ;;  %v2887_v23 = vld [vmem:[#allocation2 + $0xf4] ss:$8 sps:$4 sm:$0xff]   ;;  %v2889_v24 = vld [vmem:[#allocation2 + $0xf0] ss:$8 sps:$4 sm:$0xff]   ;;  %v2890_v25 = vld [vmem:[#allocation2 + $0xe4] ss:$8 sps:$4 sm:$0xff]  }
  0x4b   :  { %v2916_v26 = vld [vmem:[%s3597_s2 + $0x28] sm:$0xff]   ;;  %v2918_v28 = vld [vmem:[%s3597_s2 + $0x20] sm:$0xff]   ;;  %v2919_v30 = vld [vmem:[%s3597_s2 + $0x58] sm:$0xff]   ;;  %vm110_vm9 = vcmp.lt.s32.totalorder %v3402_v54, 2 }
  0x4c   :  { %331 = vmatpush1.bf16.msra.mxu0 %v2871_v5  ;;  %v2892_v29 = vld [vmem:[#allocation2 + $0xe0] ss:$8 sps:$4 sm:$0xff]   ;;  %v2893_v31 = vld [vmem:[#allocation2 + $0xd4] ss:$8 sps:$4 sm:$0xff]   ;;  %v2895_v33 = vld [vmem:[#allocation2 + $0xd0] ss:$8 sps:$4 sm:$0xff]  }
  0x4d   :  { %332 = vmatprep.subr.bf16.mxu0 %v2872_v6  ;;  %2659 = vmatpush3.bf16.msra.mxu1 %v2914_v21  ;;  %v2920_v32 = vld [vmem:[%s3597_s2 + $0x18] sm:$0xff]   ;;  %v2921_v34 = vld [vmem:[%s3597_s2 + $0x50] sm:$0xff]   ;;  %v2896_v35 = vld [vmem:[#allocation2 + $0xc4] ss:$8 sps:$4 sm:$0xff]  }
  0x4e   :  { %2660 = vmatprep.subr.bf16.mxu1 %v2915_v22  ;;  %v2898_v36 = vld [vmem:[#allocation2 + $0xc0] ss:$8 sps:$4 sm:$0xff]   ;;  %v2899_v37 = vld [vmem:[#allocation2 + $0xb4] ss:$8 sps:$4 sm:$0xff]   ;;  %v2901_v38 = vld [vmem:[#allocation2 + $0xb0] ss:$8 sps:$4 sm:$0xff]  }
  0x4f   :  { %v2902_v39 = vld [vmem:[#allocation2 + $0xa4] ss:$8 sps:$4 sm:$0xff]   ;;  %v2904_v40 = vld [vmem:[#allocation2 + $0xa0] ss:$8 sps:$4 sm:$0xff]   ;;  %v2905_v41 = vld [vmem:[#allocation2 + $0x94] ss:$8 sps:$4 sm:$0xff]  }
  0x50   :  { %333 = vmatpush1.bf16.msra.mxu0 %v2874_v7  ;;  %v2907_v42 = vld [vmem:[#allocation2 + $0x90] ss:$8 sps:$4 sm:$0xff]   ;;  %v2908_v43 = vld [vmem:[#allocation2 + $0x84] ss:$8 sps:$4 sm:$0xff]   ;;  %v2910_v44 = vld [vmem:[#allocation2 + $0x80] ss:$8 sps:$4 sm:$0xff]  }
  0x51   :  { %334 = vmatprep.subr.bf16.mxu0 %v2875_v8  ;;  %2661 = vmatpush3.bf16.msra.mxu1 %v2916_v26  ;;  %v122_v45 = vld [vmem:[%s3595_s0] sm:$0xff]  ;;  %v2922_v47 = vld [vmem:[%s3597_s2 + $0x10] sm:$0xff]   ;;  %v2923_v48 = vld [vmem:[%s3597_s2 + $0x48] sm:$0xff]  }
  0x52   :  { %2662 = vmatprep.subr.bf16.mxu1 %v2917_v27  ;;  %v156_v46 = vpack.c.bf16 %v122_v45, %v122_v45  ;;  %v2924_v49 = vld [vmem:[%s3597_s2 + $0x8] sm:$0xff]   ;;  %v2925_v50 = vld [vmem:[%s3597_s2 + $0x40] sm:$0xff]   ;;  %v2927_v7 = vld [vmem:[%s3598_s3 + $0x38] sm:$0xff]  }
  0x53   :  { %v2926_v51 = vld [vmem:[%s3597_s2] sm:$0xff]   ;;  %v3407_v57 = vld [vmem:[#allocation9 + $0x8] sm:$0xff]  ;;  %vm115_vm7 = vmand %vm113_vm5, %vm114_vm6 }
  0x54   :  { %335 = vmatpush1.bf16.msra.mxu0 %v2877_v9  ;;  %v3405_v56 = vld [vmem:[#allocation9] sm:$0xff]  ;;  %v165_v59 = vrot.slane %v3407_v57, %v160_v55  ;;  %v2928_v9 = vld [vmem:[%s3598_s3 + $0x30] sm:$0xff]   ;;  %v2933_v14 = vld [vmem:[%s3598_s3 + $0x8] sm:$0xff]  }
  0x55   :  { %336 = vmatprep.subr.bf16.mxu0 %v2878_v10  ;;  %2663 = vmatpush3.bf16.msra.mxu1 %v2918_v28  ;;  %v161_v58 = vrot.slane %v3405_v56, %v160_v55  ;;  %v2929_v10 = vld [vmem:[%s3598_s3 + $0x28] sm:$0xff]   ;;  %v2935_v16 = vld [vmem:[#allocation4 + $0xe0] ss:$16 sps:$4 sm:$0xff]   ;;  %v2937_v17 = vld [vmem:[#allocation4 + $0xe4] ss:$16 sps:$4 sm:$0xff]  }
  0x56   :  { %2664 = vmatprep.subr.bf16.mxu1 %v2919_v30  ;;  %v2940_v18 = vld [vmem:[#allocation4 + $0xec] ss:$16 sps:$4 sm:$0xff]   ;;  %v2943_v19 = vld [vmem:[#allocation4 + $0xc4] ss:$16 sps:$4 sm:$0xff]   ;;  %v2947_v22 = vld [vmem:[#allocation4 + $0xa0] ss:$16 sps:$4 sm:$0xff]  }
  0x57   :  { %v2949_v21 = vld [vmem:[#allocation4 + $0xa4] ss:$16 sps:$4 sm:$0xff]   ;;  %v2959_v26 = vld [vmem:[#allocation4 + $0x60] ss:$16 sps:$4 sm:$0xff]   ;;  %v2958_v45 = vld [vmem:[#allocation4 + $0x8c] ss:$16 sps:$4 sm:$0xff]  }
  0x58   :  { %337 = vmatpush1.bf16.msra.mxu0 %v2880_v11  ;;  %v2930_v11 = vld [vmem:[%s3598_s3 + $0x20] sm:$0xff]   ;;  %v2976_v55 = vld [vmem:[#allocation4 + $0x2c] ss:$16 sps:$4 sm:$0xff]  }
  0x59   :  { %338 = vmatprep.subr.bf16.mxu0 %v2881_v12  ;;  %2665 = vmatpush3.bf16.msra.mxu1 %v2920_v32  ;;  %v2931_v12 = vld [vmem:[%s3598_s3 + $0x18] sm:$0xff]   ;;  %v2967_v27 = vld [vmem:[#allocation4 + $0x44] ss:$16 sps:$4 sm:$0xff]   ;;  %v2965_v28 = vld [vmem:[#allocation4 + $0x40] ss:$16 sps:$4 sm:$0xff]  }
  0x5a   :  { %2666 = vmatprep.subr.bf16.mxu1 %v2921_v34 }
  0x5c   :  { %339 = vmatpush1.bf16.msra.mxu0 %v2883_v13  ;;  %v2932_v13 = vld [vmem:[%s3598_s3 + $0x10] sm:$0xff]  }
  0x5d   :  { %340 = vmatprep.subr.bf16.mxu0 %v2884_v15  ;;  %2667 = vmatpush3.bf16.msra.mxu1 %v2922_v47  ;;  %v2934_v15 = vld [vmem:[%s3598_s3] sm:$0xff]   ;;  %v2964_v47 = vld [vmem:[#allocation4 + $0x6c] ss:$16 sps:$4 sm:$0xff]  }
  0x5e   :  { %2668 = vmatprep.subr.bf16.mxu1 %v2923_v48  ;;  %v2962_v48 = vld [vmem:[#allocation4 + $0x68] ss:$16 sps:$4 sm:$0xff]  }
  0x60   :  { %341 = vmatpush1.bf16.msra.mxu0 %v2886_v20  ;;  %v2941_v20 = vld [vmem:[#allocation4 + $0xc0] ss:$16 sps:$4 sm:$0xff]  }
  0x61   :  { %342 = vmatprep.subr.bf16.mxu0 %v2887_v23  ;;  %2669 = vmatpush3.bf16.msra.mxu1 %v2924_v49  ;;  %v2955_v23 = vld [vmem:[#allocation4 + $0x84] ss:$16 sps:$4 sm:$0xff]   ;;  %v2970_v49 = vld [vmem:[#allocation4 + $0x4c] ss:$16 sps:$4 sm:$0xff]  }
  0x62   :  { %2670 = vmatprep.subr.bf16.mxu1 %v2925_v50  ;;  %v2968_v50 = vld [vmem:[#allocation4 + $0x48] ss:$16 sps:$4 sm:$0xff]  }
  0x64   :  { %343 = vmatpush2.bf16.msra.mxu0 %v2889_v24  ;;  %v2953_v24 = vld [vmem:[#allocation4 + $0x80] ss:$16 sps:$4 sm:$0xff]  }
  0x65   :  { %344 = vmatprep.subr.bf16.mxu0 %v2890_v25  ;;  %2671 = vmatpush3.bf16.msra.mxu1 %v2926_v51  ;;  %v2961_v25 = vld [vmem:[#allocation4 + $0x64] ss:$16 sps:$4 sm:$0xff]  }
  0x66   :  { %2758 = vmatprep.subr.bf16.mxu1 %v3270_v52  ;;  %v2973_v51 = vld [vmem:[#allocation4 + $0x24] ss:$16 sps:$4 sm:$0xff]  }
  0x68   :  { %345 = vmatpush2.bf16.msra.mxu0 %v2892_v29  ;;  %v409_v29 = vsub.s32 1, %v3402_v54 }
  0x69   :  { %346 = vmatprep.subr.bf16.mxu0 %v2893_v31 }
  0x6a   :  { %v410_v31 = vrot.slane %v3405_v56, %v409_v29  ;;  %v3007_v29 = vld [vmem:[#allocation6 + $0x48] ss:$12 sps:$4 sm:$0xff]  }
  0x6c   :  { %347 = vmatpush2.bf16.msra.mxu0 %v2895_v33 }
  0x6d   :  { %348 = vmatprep.subr.bf16.mxu0 %v2896_v35 }
  0x70   :  { %349 = vmatpush2.bf16.msra.mxu0 %v2898_v36 }
  0x71   :  { %350 = vmatprep.subr.bf16.mxu0 %v2899_v37 }
  0x74   :  { %351 = vmatpush2.bf16.msra.mxu0 %v2901_v38 }
  0x75   :  { %352 = vmatprep.subr.bf16.mxu0 %v2902_v39  ;;  %v2938_v39 = vld [vmem:[#allocation4 + $0xe8] ss:$16 sps:$4 sm:$0xff]  }
  0x78   :  { %353 = vmatpush2.bf16.msra.mxu0 %v2904_v40 }
  0x79   :  { %354 = vmatprep.subr.bf16.mxu0 %v2905_v41  ;;  %v2946_v41 = vld [vmem:[#allocation4 + $0xcc] ss:$16 sps:$4 sm:$0xff]  }
  0x7c   :  { %355 = vmatpush2.bf16.msra.mxu0 %v2907_v42  ;;  %v2944_v42 = vld [vmem:[#allocation4 + $0xc8] ss:$16 sps:$4 sm:$0xff]  }
  0x7d   :  { %356 = vmatprep.subr.bf16.mxu0 %v2908_v43  ;;  %v2952_v43 = vld [vmem:[#allocation4 + $0xac] ss:$16 sps:$4 sm:$0xff]  }
  0x80   :  { %357 = vmatpush2.bf16.msra.mxu0 %v2910_v44  ;;  %v2950_v44 = vld [vmem:[#allocation4 + $0xa8] ss:$16 sps:$4 sm:$0xff]  }
  0x81   :  { %871 = vmatprep.subr.bf16.mxu0 %v2937_v17  ;;  %v2989_v17 = vld [vmem:[#allocation6 + $0x90] ss:$12 sps:$4 sm:$0xff]  }
  0x83   :  { %359 = vmatmul.mubr.bf16.vlgmr.msra.gmra.mxu0 %v156_v46  ;;  %v2956_v46 = vld [vmem:[#allocation4 + $0x88] ss:$16 sps:$4 sm:$0xff]  }
  0x84   :  { %872 = vmatpush1.bf16.msra.mxu0 %v2935_v16  ;;  %v2994_v16 = vld [vmem:[#allocation6 + $0x214] ss:$12 sps:$4 sm:$0xff]  }
  0x85   :  { %873 = vmatprep.subr.bf16.mxu0 %v2943_v19  ;;  %v2997_v19 = vld [vmem:[#allocation6 + $0x7c] ss:$12 sps:$4 sm:$0xff]  }
  0x88   :  { %874 = vmatpush1.bf16.msra.mxu0 %v2941_v20  ;;  %v3000_v20 = vld [vmem:[#allocation6 + $0x1fc] ss:$12 sps:$4 sm:$0xff]  }
  0x89   :  { %875 = vmatprep.subr.bf16.mxu0 %v2949_v21  ;;  %v2995_v21 = vld [vmem:[#allocation6 + $0x78] ss:$12 sps:$4 sm:$0xff]  }
  0x8c   :  { %876 = vmatpush1.bf16.msra.mxu0 %v2947_v22  ;;  %v2998_v22 = vld [vmem:[#allocation6 + $0x1f8] ss:$12 sps:$4 sm:$0xff]  }
  0x8d   :  { %877 = vmatprep.subr.bf16.mxu0 %v2955_v23  ;;  %v3003_v23 = vld [vmem:[#allocation6 + $0x64] ss:$12 sps:$4 sm:$0xff]  }
  0x90   :  { %878 = vmatpush1.bf16.msra.mxu0 %v2953_v24  ;;  %v3006_v24 = vld [vmem:[#allocation6 + $0x1e4] ss:$12 sps:$4 sm:$0xff]  }
  0x91   :  { %879 = vmatprep.subr.bf16.mxu0 %v2961_v25  ;;  %v3001_v25 = vld [vmem:[#allocation6 + $0x60] ss:$12 sps:$4 sm:$0xff]  }
  0x94   :  { %880 = vmatpush1.bf16.msra.mxu0 %v2959_v26  ;;  %v3004_v26 = vld [vmem:[#allocation6 + $0x1e0] ss:$12 sps:$4 sm:$0xff]  }
  0x95   :  { %881 = vmatprep.subr.bf16.mxu0 %v2967_v27  ;;  %v3009_v27 = vld [vmem:[#allocation6 + $0x4c] ss:$12 sps:$4 sm:$0xff]  }
  0x98   :  { %882 = vmatpush1.bf16.msra.mxu0 %v2965_v28  ;;  %v3012_v28 = vld [vmem:[#allocation6 + $0x1cc] ss:$12 sps:$4 sm:$0xff]  }
  0x99   :  { %883 = vmatprep.subr.bf16.mxu0 %v2973_v51  ;;  %v3045_v51 = vld [vmem:[#allocation6 + $0x13c] ss:$12 sps:$4 sm:$0xff]  }
 0x143   :  { %v360_v60 = vpop.f32.mrf.mxu0 }
 0x144   :  { %v361_v61 = vadd.f32 %v360_v60, %v161_v58  ;;  %v2971_v58 = vld [vmem:[#allocation4 + $0x20] ss:$16 sps:$4 sm:$0xff]   ;;  %v2979_v60 = vld [vmem:[#allocation4 + $0x4] ss:$16 sps:$4 sm:$0xff]  }
 0x145   :  { %v362_v62 = vpop.f32.mrf.mxu0  ;;  %884 = vmatpush1.bf16.msra.mxu0 %v2971_v58  ;;  %v3043_v58 = vld [vmem:[#allocation6 + $0x138] ss:$12 sps:$4 sm:$0xff]  }
 0x146   :  { %vm367_vm0 = vcmp.ge.f32.partialorder %v361_v61, 0.0  ;;  %v369_v63 = vmul.f32 0.01, %v361_v61  ;;  %v363_v0 = vadd.f32 %v362_v62, %v165_v59  ;;  %v2974_v59 = vld [vmem:[#allocation4 + $0x28] ss:$16 sps:$4 sm:$0xff]   ;;  %885 = vmatprep.subr.bf16.mxu0 %v2979_v60 }
 0x147   :  { %v364_v1 = vpop.f32.mrf.mxu0  ;;  %v2977_v62 = vld [vmem:[#allocation4] ss:$16 sps:$4 sm:$0xff]  }
 0x148   :  { %vm368_vm1 = vcmp.ge.f32.partialorder %v363_v0, 0.0  ;;  %v370_v2 = vmul.f32 0.01, %v363_v0  ;;  %v371_v4 = vsel %vm367_vm0, %v361_v61, %v369_v63  ;;  %v2982_v61 = vld [vmem:[#allocation4 + $0xc] ss:$16 sps:$4 sm:$0xff]   ;;  %vm1792_vm0 = vcmask 64512  }
 0x149   :  { %v365_v3 = vpop.f32.mrf.mxu0  ;;  %v405_v8 = vpack.c.bf16 %v371_v4, %v371_v4  ;;  %v2980_v63 = vld [vmem:[#allocation4 + $0x8] ss:$16 sps:$4 sm:$0xff]   ;;  %886 = vmatpush1.bf16.msra.mxu0 %v2977_v62  ;;  %v3051_v60 = vld [vmem:[#allocation6 + $0x124] ss:$12 sps:$4 sm:$0xff]   ;;  %v3049_v62 = vld [vmem:[#allocation6 + $0x120] ss:$12 sps:$4 sm:$0xff]  }
 0x14a   :  { %v372_v5 = vsel %vm368_vm1, %v363_v0, %v370_v2  ;;  %v3272_v0 = vmov 0   ;;  %v2985_v1 = vld [vmem:[#allocation6 + $0xac] ss:$12 sps:$4 sm:$0xff]   ;;  %v569_v3 = vsub.s32 2, %v3402_v54  ;;  %vm2097_vm1 = vcmask 523264  }
 0x14b   :  { %v406_v6 = vpack.c.bf16 %v372_v5, %v372_v5  ;;  %903 = vmatprep.mubr.bf16.mxu0 %v3272_v0  ;;  %v2988_v2 = vld [vmem:[#allocation6 + $0x22c] ss:$12 sps:$4 sm:$0xff]   ;;  %1625 = vmatprep.subr.bf16.mxu0 %v2985_v1 }
 0x14c   :  { %v570_v4 = vrot.slane %v3405_v56, %v569_v3  ;;  %v3060_v1 = vld [vmem:[#allocation6 + $0x28c] ss:$12 sps:$4 sm:$0xff]   ;;  %v3058_v3 = vld [vmem:[#allocation6 + $0x288] ss:$12 sps:$4 sm:$0xff]  }
 0x14d   :  { %539 = vmatprep.mubr.bf16.mxu1 %v406_v6 }
 0x14e   :  { %540 = vmatmul.mubr.bf16.vlgmr.msra.gmra.mxu1 %v405_v8 }
 0x14f   :  { %2759 = vmatpush3.bf16.msra.mxu1 %v2927_v7  ;;  %2774 = vmatprep.mubr.msk.bf16.mxu1 %vm3271_vm2, %v3270_v52 }
 0x150   :  { %2760 = vmatprep.subr.bf16.mxu1 %v3270_v52 }
 0x153   :  { %2761 = vmatpush3.bf16.msra.mxu1 %v2928_v9 }
 0x154   :  { %2762 = vmatprep.subr.bf16.mxu1 %v3270_v52 }
 0x157   :  { %2763 = vmatpush3.bf16.msra.mxu1 %v2929_v10 }
 0x158   :  { %2764 = vmatprep.subr.bf16.mxu1 %v3270_v52 }
 0x15b   :  { %2765 = vmatpush3.bf16.msra.mxu1 %v2930_v11  ;;  %v2983_v11 = vld [vmem:[#allocation6 + $0xa8] ss:$12 sps:$4 sm:$0xff]  }
 0x15c   :  { %2766 = vmatprep.subr.bf16.mxu1 %v3270_v52 }
 0x15f   :  { %2767 = vmatpush3.bf16.msra.mxu1 %v2931_v12  ;;  %v2986_v12 = vld [vmem:[#allocation6 + $0x228] ss:$12 sps:$4 sm:$0xff]  }
 0x160   :  { %2768 = vmatprep.subr.bf16.mxu1 %v3270_v52 }
 0x163   :  { %2769 = vmatpush3.bf16.msra.mxu1 %v2932_v13 }
 0x164   :  { %2770 = vmatprep.subr.bf16.mxu1 %v3270_v52 }
 0x167   :  { %2771 = vmatpush3.bf16.msra.mxu1 %v2933_v14 }
 0x168   :  { %2772 = vmatprep.subr.bf16.mxu1 %v3270_v52 }
 0x16b   :  { %2773 = vmatpush3.bf16.msra.mxu1 %v2934_v15  ;;  %v2991_v15 = vld [vmem:[#allocation6 + $0x94] ss:$12 sps:$4 sm:$0xff]  }
 0x16c   :  { %912 = vmatprep.subr.bf16.mxu1 %v2940_v18  ;;  %v2992_v18 = vld [vmem:[#allocation6 + $0x210] ss:$12 sps:$4 sm:$0xff]  }
 0x20e   :  { %v2672_v30 = vpop.f32.mrf.mxu1 }
 0x210   :  { %v2673_v32 = vpop.f32.mrf.mxu1 }
 0x211   :  { %v2674_v33 = vadd.f32 %v2673_v32, %v2672_v30  ;;  %v3010_v30 = vld [vmem:[#allocation6 + $0x1c8] ss:$12 sps:$4 sm:$0xff]  }
 0x212   :  { %v2675_v34 = vpop.f32.mrf.mxu1  ;;  %v3018_v32 = vld [vmem:[#allocation6 + $0x1b4] ss:$12 sps:$4 sm:$0xff]  }
 0x213   :  { %v542_v35 = vadd.f32 %v2674_v33, %v410_v31  ;;  %v3015_v31 = vld [vmem:[#allocation6 + $0x34] ss:$12 sps:$4 sm:$0xff]   ;;  %v3013_v33 = vld [vmem:[#allocation6 + $0x30] ss:$12 sps:$4 sm:$0xff]  }
 0x214   :  { %v2676_v36 = vpop.f32.mrf.mxu1  ;;  %v3016_v34 = vld [vmem:[#allocation6 + $0x1b0] ss:$12 sps:$4 sm:$0xff]  }
 0x215   :  { %vm547_vm3 = vcmp.ge.f32.partialorder %v542_v35, 0.0  ;;  %v548_v37 = vmul.f32 0.01, %v542_v35  ;;  %v3024_v36 = vld [vmem:[#allocation6 + $0x19c] ss:$12 sps:$4 sm:$0xff]  }
 0x217   :  { %v549_v38 = vsel %vm547_vm3, %v542_v35, %v548_v37  ;;  %v3021_v35 = vld [vmem:[#allocation6 + $0x1c] ss:$12 sps:$4 sm:$0xff]   ;;  %v3019_v37 = vld [vmem:[#allocation6 + $0x18] ss:$12 sps:$4 sm:$0xff]   ;;  %vm2377_vm3 = vcmask 261120  }
 0x218   :  { %v566_v40 = vpack.c.bf16 %v549_v38, %v549_v38  ;;  %v3022_v38 = vld [vmem:[#allocation6 + $0x198] ss:$12 sps:$4 sm:$0xff]  }
 0x21a   :  { %2775 = vmatmul.mubr.bf16.vlgmr.msra.gmra.mxu1 %v566_v40  ;;  %v3030_v40 = vld [vmem:[#allocation6 + $0x184] ss:$12 sps:$4 sm:$0xff]  }
 0x21b   :  { %913 = vmatpush1.bf16.msra.mxu1 %v2938_v39  ;;  %944 = vmatprep.mubr.bf16.mxu1 %v3272_v0  ;;  %v3027_v39 = vld [vmem:[#allocation6 + $0x4] ss:$12 sps:$4 sm:$0xff]   ;;  %v3057_v0 = vld [vmem:[#allocation6 + $0x10c] ss:$12 sps:$4 sm:$0xff]  }
 0x21c   :  { %914 = vmatprep.subr.bf16.mxu1 %v2946_v41  ;;  %v3025_v41 = vld [vmem:[#allocation6] ss:$12 sps:$4 sm:$0xff]  }
 0x21f   :  { %915 = vmatpush1.bf16.msra.mxu1 %v2944_v42  ;;  %v3028_v42 = vld [vmem:[#allocation6 + $0x180] ss:$12 sps:$4 sm:$0xff]  }
 0x220   :  { %916 = vmatprep.subr.bf16.mxu1 %v2952_v43  ;;  %v3033_v43 = vld [vmem:[#allocation6 + $0x16c] ss:$12 sps:$4 sm:$0xff]  }
 0x223   :  { %917 = vmatpush1.bf16.msra.mxu1 %v2950_v44  ;;  %v3036_v44 = vld [vmem:[#allocation6 + $0x2ec] ss:$12 sps:$4 sm:$0xff]  }
 0x224   :  { %918 = vmatprep.subr.bf16.mxu1 %v2958_v45  ;;  %v3031_v45 = vld [vmem:[#allocation6 + $0x168] ss:$12 sps:$4 sm:$0xff]  }
 0x227   :  { %919 = vmatpush1.bf16.msra.mxu1 %v2956_v46  ;;  %v3034_v46 = vld [vmem:[#allocation6 + $0x2e8] ss:$12 sps:$4 sm:$0xff]  }
 0x228   :  { %920 = vmatprep.subr.bf16.mxu1 %v2964_v47  ;;  %v3039_v47 = vld [vmem:[#allocation6 + $0x154] ss:$12 sps:$4 sm:$0xff]  }
 0x22b   :  { %921 = vmatpush1.bf16.msra.mxu1 %v2962_v48  ;;  %v3042_v48 = vld [vmem:[#allocation6 + $0x2d4] ss:$12 sps:$4 sm:$0xff]  }
 0x22c   :  { %922 = vmatprep.subr.bf16.mxu1 %v2970_v49  ;;  %v3037_v49 = vld [vmem:[#allocation6 + $0x150] ss:$12 sps:$4 sm:$0xff]  }
 0x22f   :  { %923 = vmatpush1.bf16.msra.mxu1 %v2968_v50  ;;  %v3040_v50 = vld [vmem:[#allocation6 + $0x2d0] ss:$12 sps:$4 sm:$0xff]  }
 0x230   :  { %924 = vmatprep.subr.bf16.mxu1 %v2976_v55  ;;  %v3048_v55 = vld [vmem:[#allocation6 + $0x2bc] ss:$12 sps:$4 sm:$0xff]  }
 0x233   :  { %925 = vmatpush1.bf16.msra.mxu1 %v2974_v59  ;;  %v3046_v59 = vld [vmem:[#allocation6 + $0x2b8] ss:$12 sps:$4 sm:$0xff]  }
 0x234   :  { %926 = vmatprep.subr.bf16.mxu1 %v2982_v61  ;;  %v3054_v61 = vld [vmem:[#allocation6 + $0x2a4] ss:$12 sps:$4 sm:$0xff]  }
 0x237   :  { %927 = vmatpush1.bf16.msra.mxu1 %v2980_v63  ;;  %v3052_v63 = vld [vmem:[#allocation6 + $0x2a0] ss:$12 sps:$4 sm:$0xff]  }
 0x238   :  { %1666 = vmatprep.subr.bf16.mxu1 %v2988_v2  ;;  %v3055_v2 = vld [vmem:[#allocation6 + $0x108] ss:$12 sps:$4 sm:$0xff]  }
 0x2da   :  { %v653_v5 = vpop.f32.mrf.mxu1 }
 0x2db   :  { %v654_v6 = vadd.f32 %v653_v5, %v570_v4  ;;  %v3063_v4 = vld [vmem:[#allocation6 + $0xf4] ss:$12 sps:$4 sm:$0xff]  }
 0x2dc   :  { %v2776_v7 = vpop.f32.mrf.mxu1  ;;  %v3066_v5 = vld [vmem:[#allocation6 + $0x274] ss:$12 sps:$4 sm:$0xff]  }
 0x2dd   :  { %vm659_vm4 = vcmp.ge.f32.partialorder %v654_v6, 0.0  ;;  %v660_v8 = vmul.f32 0.01, %v654_v6  ;;  %v3064_v7 = vld [vmem:[#allocation6 + $0x270] ss:$12 sps:$4 sm:$0xff]  }
 0x2de   :  { %v656_v9 = vpop.f32.mrf.mxu1 }
 0x2df   :  { %v661_v10 = vsel %vm659_vm4, %v654_v6, %v660_v8  ;;  %v3061_v6 = vld [vmem:[#allocation6 + $0xf0] ss:$12 sps:$4 sm:$0xff]  }
 0x2e0   :  { %v694_v13 = vpack.c.bf16 %v661_v10, %v661_v10  ;;  %2434 = vst [vmem:[%s3605_s10] sm:$0xff] %v661_v10  ;;  %v2777_v14 = vpop.f32.mrf.mxu1  ;;  %v3069_v8 = vld [vmem:[#allocation6 + $0xdc] ss:$12 sps:$4 sm:$0xff]   ;;  %v3067_v10 = vld [vmem:[#allocation6 + $0xd8] ss:$12 sps:$4 sm:$0xff]  }
 0x2e1   :  { %v3072_v9 = vld [vmem:[#allocation6 + $0x25c] ss:$12 sps:$4 sm:$0xff]   ;;  %v3073_v14 = vld [vmem:[#allocation6 + $0xc0] ss:$12 sps:$4 sm:$0xff]  }
 0x2e2   :  { %904 = vmatmul.mubr.bf16.vlgmr.msra.gmra.mxu0 %v694_v13  ;;  %945 = vmatmul.mubr.bf16.vlgmr.msra.gmra.mxu1 %v694_v13  ;;  %v3078_v13 = vld [vmem:[#allocation6 + $0x244] ss:$12 sps:$4 sm:$0xff]  }
 0x2e3   :  { %1626 = vmatpush1.bf16.msra.mxu0 %v2983_v11  ;;  %1667 = vmatpush1.bf16.msra.mxu1 %v2986_v12  ;;  %v3070_v11 = vld [vmem:[#allocation6 + $0x258] ss:$12 sps:$4 sm:$0xff]  }
 0x2e4   :  { %1627 = vmatprep.subr.bf16.mxu0 %v2991_v15  ;;  %1668 = vmatprep.subr.bf16.mxu1 %v2994_v16  ;;  %v3075_v12 = vld [vmem:[#allocation6 + $0xc4] ss:$12 sps:$4 sm:$0xff]   ;;  %v3076_v15 = vld [vmem:[#allocation6 + $0x240] ss:$12 sps:$4 sm:$0xff]  }
 0x2e5   :  { %v3079_v16 = vld [vmem:[#allocation6 + $0x170] ss:$12 sps:$4 sm:$0xff]  }
 0x2e7   :  { %1628 = vmatpush1.bf16.msra.mxu0 %v2989_v17  ;;  %1669 = vmatpush1.bf16.msra.mxu1 %v2992_v18  ;;  %v3080_v17 = vld [vmem:[#allocation6 + $0x2f0] ss:$12 sps:$4 sm:$0xff]   ;;  %v697_v18 = vsub.s32 3, %v3402_v54 }
 0x2e8   :  { %1629 = vmatprep.subr.bf16.mxu0 %v2997_v19  ;;  %1670 = vmatprep.subr.bf16.mxu1 %v3000_v20  ;;  %v3452_v19 = vld [vmem:[#allocation9 + $0x10] sm:$0xff]  ;;  %v3454_v20 = vld [vmem:[#allocation9 + $0x18] sm:$0xff] }
 0x2eb   :  { %1630 = vmatpush1.bf16.msra.mxu0 %v2995_v21  ;;  %1671 = vmatpush1.bf16.msra.mxu1 %v2998_v22  ;;  %v698_v21 = vrot.slane %v3405_v56, %v697_v18  ;;  %v706_v22 = vrot.slane %v3452_v19, %v697_v18 }
 0x2ec   :  { %1631 = vmatprep.subr.bf16.mxu0 %v3003_v23  ;;  %1672 = vmatprep.subr.bf16.mxu1 %v3006_v24  ;;  %v702_v23 = vrot.slane %v3407_v57, %v697_v18  ;;  %v710_v24 = vrot.slane %v3454_v20, %v697_v18  ;;  %v3097_v18 = vld [vmem:[#allocation6 + $0x50] ss:$12 sps:$4 sm:$0xff]  }
 0x2ef   :  { %1632 = vmatpush1.bf16.msra.mxu0 %v3001_v25  ;;  %1673 = vmatpush1.bf16.msra.mxu1 %v3004_v26 }
 0x2f0   :  { %1633 = vmatprep.subr.bf16.mxu0 %v3009_v27  ;;  %1674 = vmatprep.subr.bf16.mxu1 %v3012_v28 }
 0x2f3   :  { %1634 = vmatpush1.bf16.msra.mxu0 %v3007_v29  ;;  %1675 = vmatpush1.bf16.msra.mxu1 %v3010_v30 }
 0x2f4   :  { %1635 = vmatprep.subr.bf16.mxu0 %v3015_v31  ;;  %1676 = vmatprep.subr.bf16.mxu1 %v3018_v32 }
 0x2f7   :  { %1636 = vmatpush1.bf16.msra.mxu0 %v3013_v33  ;;  %1677 = vmatpush1.bf16.msra.mxu1 %v3016_v34 }
 0x2f8   :  { %1637 = vmatprep.subr.bf16.mxu0 %v3021_v35  ;;  %1678 = vmatprep.subr.bf16.mxu1 %v3024_v36 }
 0x2fb   :  { %1638 = vmatpush1.bf16.msra.mxu0 %v3019_v37  ;;  %1679 = vmatpush1.bf16.msra.mxu1 %v3022_v38 }
 0x2fc   :  { %1639 = vmatprep.subr.bf16.mxu0 %v3027_v39  ;;  %1680 = vmatprep.subr.bf16.mxu1 %v3030_v40 }
 0x2ff   :  { %1640 = vmatpush1.bf16.msra.mxu0 %v3025_v41  ;;  %1681 = vmatpush1.bf16.msra.mxu1 %v3028_v42 }
 0x300   :  { %1641 = vmatprep.subr.bf16.mxu0 %v3033_v43  ;;  %1682 = vmatprep.subr.bf16.mxu1 %v3036_v44 }
 0x303   :  { %1642 = vmatpush2.bf16.msra.mxu0 %v3031_v45  ;;  %1683 = vmatpush2.bf16.msra.mxu1 %v3034_v46 }
 0x304   :  { %1643 = vmatprep.subr.bf16.mxu0 %v3039_v47  ;;  %1684 = vmatprep.subr.bf16.mxu1 %v3042_v48 }
 0x307   :  { %1644 = vmatpush2.bf16.msra.mxu0 %v3037_v49  ;;  %1685 = vmatpush2.bf16.msra.mxu1 %v3040_v50 }
 0x308   :  { %1645 = vmatprep.subr.bf16.mxu0 %v3045_v51  ;;  %1686 = vmatprep.subr.bf16.mxu1 %v3048_v55 }
 0x30b   :  { %1646 = vmatpush2.bf16.msra.mxu0 %v3043_v58  ;;  %1687 = vmatpush2.bf16.msra.mxu1 %v3046_v59 }
 0x30c   :  { %1647 = vmatprep.subr.bf16.mxu0 %v3051_v60  ;;  %1688 = vmatprep.subr.bf16.mxu1 %v3054_v61 }
 0x30f   :  { %1648 = vmatpush2.bf16.msra.mxu0 %v3049_v62  ;;  %1689 = vmatpush2.bf16.msra.mxu1 %v3052_v63  ;;  %v3081_v63 = vld [vmem:[#allocation6 + $0xb0] ss:$12 sps:$4 sm:$0xff]  }
 0x310   :  { %1649 = vmatprep.subr.bf16.mxu0 %v3057_v0  ;;  %1690 = vmatprep.subr.bf16.mxu1 %v3060_v1 }
 0x313   :  { %1650 = vmatpush2.bf16.msra.mxu0 %v3055_v2  ;;  %1691 = vmatpush2.bf16.msra.mxu1 %v3058_v3  ;;  %v3082_v2 = vld [vmem:[#allocation6 + $0x230] ss:$12 sps:$4 sm:$0xff]  }
 0x314   :  { %1651 = vmatprep.subr.bf16.mxu0 %v3063_v4  ;;  %1692 = vmatprep.subr.bf16.mxu1 %v3066_v5  ;;  %v3083_v4 = vld [vmem:[#allocation6 + $0x158] ss:$12 sps:$4 sm:$0xff]  }
 0x315   :  { %v3084_v5 = vld [vmem:[#allocation6 + $0x2d8] ss:$12 sps:$4 sm:$0xff]  }
 0x317   :  { %1652 = vmatpush2.bf16.msra.mxu0 %v3061_v6  ;;  %1693 = vmatpush2.bf16.msra.mxu1 %v3064_v7  ;;  %v3085_v6 = vld [vmem:[#allocation6 + $0x98] ss:$12 sps:$4 sm:$0xff]  }
 0x318   :  { %1653 = vmatprep.subr.bf16.mxu0 %v3069_v8  ;;  %1694 = vmatprep.subr.bf16.mxu1 %v3072_v9  ;;  %v3086_v7 = vld [vmem:[#allocation6 + $0x218] ss:$12 sps:$4 sm:$0xff]   ;;  %v3087_v8 = vld [vmem:[#allocation6 + $0x140] ss:$12 sps:$4 sm:$0xff]  }
 0x319   :  { %v3088_v9 = vld [vmem:[#allocation6 + $0x2c0] ss:$12 sps:$4 sm:$0xff]  }
 0x31b   :  { %1654 = vmatpush2.bf16.msra.mxu0 %v3067_v10  ;;  %1695 = vmatpush2.bf16.msra.mxu1 %v3070_v11  ;;  %v3089_v10 = vld [vmem:[#allocation6 + $0x80] ss:$12 sps:$4 sm:$0xff]  }
 0x31c   :  { %1655 = vmatprep.subr.bf16.mxu0 %v3075_v12  ;;  %1696 = vmatprep.subr.bf16.mxu1 %v3078_v13  ;;  %v3090_v11 = vld [vmem:[#allocation6 + $0x200] ss:$12 sps:$4 sm:$0xff]   ;;  %v3091_v12 = vld [vmem:[#allocation6 + $0x128] ss:$12 sps:$4 sm:$0xff]  }
 0x31d   :  { %v3092_v13 = vld [vmem:[#allocation6 + $0x2a8] ss:$12 sps:$4 sm:$0xff]  }
 0x31f   :  { %1656 = vmatpush2.bf16.msra.mxu0 %v3073_v14  ;;  %1697 = vmatpush2.bf16.msra.mxu1 %v3076_v15  ;;  %v3093_v14 = vld [vmem:[#allocation6 + $0x68] ss:$12 sps:$4 sm:$0xff]  }
 0x320   :  { %2687 = vmatprep.subr.bf16.mxu0 %v3079_v16  ;;  %2709 = vmatprep.subr.bf16.mxu1 %v3080_v17  ;;  %v3094_v15 = vld [vmem:[#allocation6 + $0x1e8] ss:$12 sps:$4 sm:$0xff]   ;;  %v3095_v16 = vld [vmem:[#allocation6 + $0x110] ss:$12 sps:$4 sm:$0xff]  }
 0x321   :  { %v3096_v17 = vld [vmem:[#allocation6 + $0x290] ss:$12 sps:$4 sm:$0xff]  }
 0x3a2   :  { %v905_v25 = vpop.f32.mrf.mxu0  ;;  %v946_v26 = vpop.f32.mrf.mxu1 }
 0x3a3   :  { %v906_v27 = vadd.f32 %v905_v25, %v698_v21  ;;  %v947_v28 = vadd.f32 %v946_v26, %v706_v22  ;;  %v3098_v21 = vld [vmem:[#allocation6 + $0x1d0] ss:$12 sps:$4 sm:$0xff]   ;;  %v3099_v22 = vld [vmem:[#allocation6 + $0xf8] ss:$12 sps:$4 sm:$0xff]   ;;  %v3103_v26 = vld [vmem:[#allocation6 + $0xe0] ss:$12 sps:$4 sm:$0xff]  }
 0x3a4   :  { %v907_v29 = vpop.f32.mrf.mxu0  ;;  %v948_v30 = vpop.f32.mrf.mxu1  ;;  %v3102_v25 = vld [vmem:[#allocation6 + $0x1b8] ss:$12 sps:$4 sm:$0xff]  }
 0x3a5   :  { %v2534_v31 = vmul.f32 -1.442695, %v906_v27  ;;  %v2536_v32 = vmul.f32 -1.442695, %v947_v28  ;;  %v908_v33 = vadd.f32 %v907_v29, %v702_v23  ;;  %v949_v34 = vadd.f32 %v948_v30, %v710_v24  ;;  %v3100_v23 = vld [vmem:[#allocation6 + $0x278] ss:$12 sps:$4 sm:$0xff]  }
 0x3a6   :  { %v909_v35 = vpop.f32.mrf.mxu0  ;;  %v950_v36 = vpop.f32.mrf.mxu1  ;;  %v3101_v24 = vld [vmem:[#allocation6 + $0x38] ss:$12 sps:$4 sm:$0xff]   ;;  %v3106_v29 = vld [vmem:[#allocation6 + $0x1a0] ss:$12 sps:$4 sm:$0xff]   ;;  %v3107_v30 = vld [vmem:[#allocation6 + $0xc8] ss:$12 sps:$4 sm:$0xff]  }
 0x3a7   :  { %3127 = vpow2.f32 %v2534_v31  ;;  %v2535_v37 = vmul.f32 -1.442695, %v908_v33  ;;  %v2537_v38 = vmul.f32 -1.442695, %v949_v34  ;;  %v3108_v31 = vld [vmem:[#allocation6 + $0x248] ss:$12 sps:$4 sm:$0xff]  }
 0x3a8   :  { %3129 = vpow2.f32 %v2536_v32  ;;  %v910_v39 = vpop.f32.mrf.mxu0  ;;  %v951_v40 = vpop.f32.mrf.mxu1  ;;  %v3109_v32 = vld [vmem:[#allocation6 + $0x8] ss:$12 sps:$4 sm:$0xff]   ;;  %v3479_v35 = vsub.s32 4, %v3402_v54 }
 0x3a9   :  { %3131 = vpow2.f32 %v2535_v37 }
 0x3aa   :  { %3133 = vpow2.f32 %v2537_v38  ;;  %v1790_v40 = vrot.slane %v3405_v56, %v3479_v35 }
 0x3b4   :  { %v3128_v41 = vpop.eup %3127 }
 0x3b5   :  { %v3130_v42 = vpop.eup %3129  ;;  %v965_v43 = vadd.f32 1.0, %v3128_v41 }
 0x3b6   :  { %v3132_v44 = vpop.eup %3131  ;;  %v967_v45 = vadd.f32 1.0, %v3130_v42 }
 0x3b7   :  { %v3134_v46 = vpop.eup %3133  ;;  %3135 = vrcp.f32 %v965_v43  ;;  %v966_v47 = vadd.f32 1.0, %v3132_v44 }
 0x3b8   :  { %3137 = vrcp.f32 %v967_v45  ;;  %v968_v48 = vadd.f32 1.0, %v3134_v46 }
 0x3b9   :  { %3139 = vrcp.f32 %v966_v47 }
 0x3ba   :  { %3141 = vrcp.f32 %v968_v48 }
 0x3c4   :  { %v3136_v49 = vpop.eup %3135 }
 0x3c5   :  { %v3138_v50 = vpop.eup %3137  ;;  %v977_v55 = vmul.f32 %v3136_v49, %v906_v27  ;;  %v3104_v27 = vld [vmem:[#allocation6 + $0x260] ss:$12 sps:$4 sm:$0xff]  }
 0x3c6   :  { %v3140_v51 = vpop.eup %3139  ;;  %v979_v59 = vmul.f32 %v3138_v50, %v947_v28  ;;  %v3105_v28 = vld [vmem:[#allocation6 + $0x20] ss:$12 sps:$4 sm:$0xff]  }
 0x3c7   :  { %v3142_v58 = vpop.eup %3141  ;;  %v978_v60 = vmul.f32 %v3140_v51, %v908_v33  ;;  %v3460_v0 = vpack.c.bf16 %v977_v55, %v977_v55  ;;  %v3110_v33 = vld [vmem:[#allocation6 + $0x188] ss:$12 sps:$4 sm:$0xff]  }
 0x3c8   :  { %v980_v61 = vmul.f32 %v3142_v58, %v949_v34  ;;  %v3462_v3 = vpack.c.bf16 %v979_v59, %v979_v59  ;;  %v109_v34 = vand.u32 127, %v106_v53 }
 0x3c9   :  { %v1110_v62 = vpack.c.bf16 %v978_v60, %v978_v60 }
 0x3ca   :  { %v1112_v1 = vpack.c.bf16 %v980_v61, %v980_v61  ;;  %vm116_vm8 = vcmp.ge.s32.totalorder %v109_v34, 2  ;;  %vm111_vm10 = vcmp.lt.s32.totalorder %v109_v34, 2  ;;  %vm118_vm12 = vcmp.lt.s32.totalorder %v109_v34, 4 }
 0x3cb   :  { %1657 = vmatprep.mubr.bf16.mxu0 %v1110_v62  ;;  %vm117_vm11 = vmand %vm115_vm7, %vm116_vm8 }
 0x3cc   :  { %1698 = vmatprep.mubr.bf16.mxu1 %v1112_v1  ;;  %1658 = vmatmul.mubr.bf16.vlgmr.msra.gmra.mxu0 %v3460_v0  ;;  %vm3481_vm13 = vmand %vm110_vm9, %vm111_vm10 }
 0x3cd   :  { %1699 = vmatmul.mubr.bf16.vlgmr.msra.gmra.mxu1 %v3462_v3  ;;  %2688 = vmatpush3.bf16.msra.mxu0 %v3081_v63  ;;  %vm119_vm14 = vmand %vm117_vm11, %vm118_vm12 }
 0x3ce   :  { %2710 = vmatpush3.bf16.msra.mxu1 %v3082_v2  ;;  %1739 = vmatprep.mubr.bf16.mxu0 %v1110_v62  ;;  %vm120_vm15 = vmor %vm3481_vm13, %vm119_vm14 }
 0x3cf   :  { %1779 = vmatprep.mubr.bf16.mxu1 %v1112_v1  ;;  %2689 = vmatprep.subr.bf16.mxu0 %v3083_v4  ;;  %v3493_v47 = vsel %vm120_vm15, 0.5, %v3270_v52 }
 0x3d0   :  { %2711 = vmatprep.subr.bf16.mxu1 %v3084_v5  ;;  %v3111_v5 = vld [vmem:[%s3601_s6 + $0x38] sm:$0xff]  }
 0x3d1   :  { %2690 = vmatpush3.bf16.msra.mxu0 %v3085_v6  ;;  %v3112_v6 = vld [vmem:[%s3601_s6 + $0x30] sm:$0xff]  }
 0x3d2   :  { %2712 = vmatpush3.bf16.msra.mxu1 %v3086_v7  ;;  %2691 = vmatprep.subr.bf16.mxu0 %v3087_v8  ;;  %v3113_v7 = vld [vmem:[%s3601_s6 + $0x28] sm:$0xff]   ;;  %v3114_v8 = vld [vmem:[%s3601_s6 + $0x20] sm:$0xff]  }
 0x3d3   :  { %2713 = vmatprep.subr.bf16.mxu1 %v3088_v9  ;;  %v3115_v9 = vld [vmem:[%s3601_s6 + $0x18] sm:$0xff]  }
 0x3d5   :  { %2692 = vmatpush3.bf16.msra.mxu0 %v3089_v10  ;;  %v3116_v10 = vld [vmem:[%s3601_s6 + $0x10] sm:$0xff]  }
 0x3d6   :  { %2714 = vmatpush3.bf16.msra.mxu1 %v3090_v11  ;;  %2693 = vmatprep.subr.bf16.mxu0 %v3091_v12  ;;  %v3117_v11 = vld [vmem:[%s3601_s6 + $0x8] sm:$0xff]   ;;  %v3118_v12 = vld [vmem:[%s3601_s6] sm:$0xff]   ;;  %s3273_s6 = smov 96  }
 0x3d7   :  { %2715 = vmatprep.subr.bf16.mxu1 %v3092_v13  ;;  %v3119_v13 = vld [vmem:[#allocation7 + $0x18] sm:$0xff]  }
 0x3d9   :  { %2694 = vmatpush3.bf16.msra.mxu0 %v3093_v14  ;;  %v3120_v14 = vld [vmem:[#allocation7 + $0x10] sm:$0xff]  }
 0x3da   :  { %2716 = vmatpush3.bf16.msra.mxu1 %v3094_v15  ;;  %2695 = vmatprep.subr.bf16.mxu0 %v3095_v16  ;;  %v3121_v15 = vld [vmem:[#allocation7 + $0x8] sm:$0xff]  }
 0x3db   :  { %2717 = vmatprep.subr.bf16.mxu1 %v3096_v17 }
 0x3dd   :  { %2696 = vmatpush3.bf16.msra.mxu0 %v3097_v18 }
 0x3de   :  { %2718 = vmatpush3.bf16.msra.mxu1 %v3098_v21  ;;  %2697 = vmatprep.subr.bf16.mxu0 %v3099_v22  ;;  %v1943_v21 = vrot.slane %v3407_v57, %v3479_v35 }
 0x3df   :  { %2719 = vmatprep.subr.bf16.mxu1 %v3100_v23  ;;  %v1948_v23 = vrot.slane %v3452_v19, %v3479_v35  ;;  %v1971_v19 = vrot.slane %v3454_v20, %v3479_v35 }
 0x3e1   :  { %2698 = vmatpush3.bf16.msra.mxu0 %v3101_v24 }
 0x3e2   :  { %2720 = vmatpush3.bf16.msra.mxu1 %v3102_v25  ;;  %2699 = vmatprep.subr.bf16.mxu0 %v3103_v26 }
 0x3e3   :  { %2721 = vmatprep.subr.bf16.mxu1 %v3104_v27 }
 0x3e5   :  { %2700 = vmatpush3.bf16.msra.mxu0 %v3105_v28 }
 0x3e6   :  { %2722 = vmatpush3.bf16.msra.mxu1 %v3106_v29  ;;  %2701 = vmatprep.subr.bf16.mxu0 %v3107_v30  ;;  %v2071_v29 = vsub.s32 5, %v3402_v54 }
 0x3e7   :  { %2723 = vmatprep.subr.bf16.mxu1 %v3108_v31  ;;  %v3122_v31 = vld [vmem:[#allocation7] sm:$0xff]  }
 0x3e8   :  { %v2072_v30 = vrot.slane %v3405_v56, %v2071_v29 }
 0x3e9   :  { %2702 = vmatpush3.bf16.msra.mxu0 %v3109_v32  ;;  %v3551_v32 = vrot.slane %v3407_v57, %v2071_v29 }
 0x3ea   :  { %2724 = vmatpush3.bf16.msra.mxu1 %v3110_v33  ;;  %2778 = vmatprep.subr.mxu0 %v3270_v52 }
 0x3eb   :  { %2808 = vmatprep.subr.bf16.mxu1 %v3270_v52  ;;  %2286 = vrot.lane.b32.xlu0 %v2072_v30, %s3261_s23 }
 0x3ec   :  { %1740 = vmatmul.mubr.bf16.vlgmr.msra.gmra.mxu0 %v3460_v0  ;;  %2330 = vrot.lane.b32.xlu1 %v3551_v32, %s3261_s23 }
 0x3ed   :  { %1780 = vmatmul.mubr.bf16.vlgmr.msra.gmra.mxu1 %v3462_v3  ;;  %2780 = vmatprep.mubr.msk.f32.mxu0 %vm3271_vm2, %v3270_v52 }
 0x3ee   :  { %2816 = vmatprep.mubr.msk.bf16.mxu1 %vm3271_vm2, %v3270_v52  ;;  %2809 = vmatpush3.bf16.msra.mxu1 %v3119_v13 }
 0x3ef   :  { %2810 = vmatprep.subr.bf16.mxu1 %v3270_v52 }
 0x3f2   :  { %2811 = vmatpush3.bf16.msra.mxu1 %v3120_v14 }
 0x3f3   :  { %2812 = vmatprep.subr.bf16.mxu1 %v3270_v52 }
 0x3f6   :  { %2813 = vmatpush3.bf16.msra.mxu1 %v3121_v15 }
 0x3f7   :  { %2814 = vmatprep.subr.bf16.mxu1 %v3270_v52 }
 0x3fa   :  { %2815 = vmatpush3.bf16.msra.mxu1 %v3122_v31 }
 0x3fb   :  { %2820 = vmatprep.subr.mxu1 %v3270_v52 }
 0x48c   :  { %v1659_v37 = vpop.f32.mrf.mxu0 }
 0x48d   :  { %v1700_v53 = vpop.f32.mrf.mxu1 }
 0x48e   :  { %v1701_v38 = vadd.f32 %v1700_v53, %v1659_v37  ;;  %v1661_v39 = vpop.f32.mrf.mxu0  ;;  %v2287_v53 = vpop.permute.xlu0 %2286 }
 0x48f   :  { %v1702_v41 = vpop.f32.mrf.mxu1 }
 0x490   :  { %2435 = vst [vmem:[%s3605_s10 + $0x8] sm:$0xff] %v1701_v38  ;;  %v1703_v42 = vadd.f32 %v1702_v41, %v1661_v39  ;;  %v1663_v43 = vpop.f32.mrf.mxu0 }
 0x491   :  { %v1704_v44 = vpop.f32.mrf.mxu1  ;;  %v2331_v43 = vpop.permute.xlu1 %2330 }
 0x492   :  { %v1791_v45 = vadd.f32 %v1790_v40, %v1703_v42  ;;  %v1664_v46 = vpop.f32.mrf.mxu0 }
 0x493   :  { %v1705_v48 = vpop.f32.mrf.mxu1 }
 0x494   :  { %2779 = vmatpush3.msra.mxu0 %v1791_v45 }
 0x495   :  { %2781 = vmatmul.mubr.msk.f32.vlgmr.msra.gmra.mxu0 %vm1792_vm0, %v3493_v47  ;;  %2783 = vmatprep.subr.mxu0 %v3270_v52 }
 0x496   :  { %2785 = vmatprep.mubr.msk.f32.mxu0 %vm3271_vm2, %v3270_v52 }
 0x4ac   :  { %v2703_v49 = vpop.f32.mrf.mxu0 }
 0x4ad   :  { %v2725_v50 = vpop.f32.mrf.mxu1 }
 0x4ae   :  { %v2704_v51 = vpop.f32.mrf.mxu0 }
 0x4af   :  { %v2705_v55 = vadd.f32 %v2704_v51, %v2703_v49  ;;  %v2726_v58 = vpop.f32.mrf.mxu1 }
 0x4b0   :  { %v2727_v59 = vadd.f32 %v2726_v58, %v2725_v50  ;;  %v2706_v60 = vpop.f32.mrf.mxu0 }
 0x4b1   :  { %v2728_v61 = vpop.f32.mrf.mxu1  ;;  %v3124_v60 = vld [vmem:[%s3603_s8 + $0x10] sm:$0xff]  }
 0x4b2   :  { %v1782_v62 = vadd.f32 %v2727_v59, %v2705_v55  ;;  %v2707_v63 = vpop.f32.mrf.mxu0  ;;  %v3123_v59 = vld [vmem:[%s3603_s8 + $0x18] sm:$0xff]   ;;  %v3126_v61 = vld [vmem:[%s3603_s8] sm:$0xff]  }
 0x4b3   :  { %v2729_v0 = vpop.f32.mrf.mxu1 }
 0x4b4   :  { %2436 = vst [vmem:[%s3605_s10 + $0x10] sm:$0xff] %v1782_v62 }
 0x555   :  { %v1862_v1 = vpop.f32.mrf.mxu0 }
 0x556   :  { %v1866_v2 = vsub.f32 %v1791_v45, %v1862_v1 }
 0x557   :  { %v2782_v3 = vpop.f32.mrf.mxu0 }
 0x558   :  { %v1867_v4 = vmul.f32 %v1866_v2, %v1866_v2 }
 0x55a   :  { %2784 = vmatpush3.msra.mxu0 %v1867_v4 }
 0x55b   :  { %2786 = vmatmul.mubr.msk.f32.vlgmr.msra.gmra.mxu0 %vm1792_vm0, %v3493_v47  ;;  %2788 = vmatprep.subr.bf16.mxu0 %v3270_v52 }
 0x55c   :  { %2789 = vmatpush3.bf16.msra.mxu0 %v3111_v5  ;;  %2804 = vmatprep.mubr.msk.bf16.mxu0 %vm3271_vm2, %v3270_v52 }
 0x55d   :  { %2790 = vmatprep.subr.bf16.mxu0 %v3270_v52 }
 0x560   :  { %2791 = vmatpush3.bf16.msra.mxu0 %v3112_v6 }
 0x561   :  { %2792 = vmatprep.subr.bf16.mxu0 %v3270_v52 }
 0x564   :  { %2793 = vmatpush3.bf16.msra.mxu0 %v3113_v7 }
 0x565   :  { %2794 = vmatprep.subr.bf16.mxu0 %v3270_v52 }
 0x568   :  { %2795 = vmatpush3.bf16.msra.mxu0 %v3114_v8 }
 0x569   :  { %2796 = vmatprep.subr.bf16.mxu0 %v3270_v52 }
 0x56c   :  { %2797 = vmatpush3.bf16.msra.mxu0 %v3115_v9 }
 0x56d   :  { %2798 = vmatprep.subr.bf16.mxu0 %v3270_v52 }
 0x570   :  { %2799 = vmatpush3.bf16.msra.mxu0 %v3116_v10 }
 0x571   :  { %2800 = vmatprep.subr.bf16.mxu0 %v3270_v52 }
 0x574   :  { %2801 = vmatpush3.bf16.msra.mxu0 %v3117_v11 }
 0x575   :  { %2802 = vmatprep.subr.bf16.mxu0 %v3270_v52 }
 0x578   :  { %2803 = vmatpush3.bf16.msra.mxu0 %v3118_v12 }
 0x61b   :  { %v1934_v16 = vpop.f32.mrf.mxu0 }
 0x61c   :  { %v1935_v17 = vadd.f32 1e-05, %v1934_v16 }
 0x61d   :  { %v2787_v18 = vpop.f32.mrf.mxu0 }
 0x61e   :  { %3143 = vrsqrt.f32 %v1935_v17 }
 0x62b   :  { %v3144_v22 = vpop.eup %3143 }
 0x62c   :  { %v1939_v24 = vmul.f32 %v3144_v22, %v1866_v2 }
 0x62e   :  { %v1944_v25 = vmul.f32 %v1943_v21, %v1939_v24 }
 0x630   :  { %v1949_v26 = vadd.f32 %v1948_v23, %v1944_v25 }
 0x632   :  { %v1950_v27 = vmax.f32 %v1949_v26, 0.0 }
 0x634   :  { %v1967_v28 = vpack.c.bf16 %v1950_v27, %v1950_v27 }
 0x636   :  { %2805 = vmatmul.mubr.bf16.vlgmr.msra.gmra.mxu0 %v1967_v28 }
 0x6f6   :  { %v2054_v33 = vpop.f32.mrf.mxu0 }
 0x6f7   :  { %v2055_v34 = vadd.f32 %v2054_v33, %v1971_v19 }
 0x6f8   :  { %v2806_v54 = vpop.f32.mrf.mxu0 }
 0x6f9   :  { %v2068_v56 = vpack.c.bf16 %v2055_v34, %v2055_v34  ;;  %v2384_v36 = vmul.f32 %v2055_v34, %v2055_v34 }
 0x6fa   :  { %v2057_v37 = vpop.f32.mrf.mxu0 }
 0x6fb   :  { %2386 = vrot.lane.b32.xlu0 %v2384_v36, %s3273_s6  ;;  %2817 = vmatmul.mubr.msk.bf16.vlgmr.msra.gmra.mxu1 %vm2097_vm1, %v2068_v56 }
 0x6fc   :  { %v2807_v57 = vpop.f32.mrf.mxu0  ;;  %2822 = vmatprep.mubr.msk.f32.mxu1 %vm3271_vm2, %v3270_v52 }
 0x76d   :  { %v2387_v38 = vpop.permute.xlu0 %2386 }
 0x76e   :  { %v2389_v20 = vsel %vm2377_vm3, %v2387_v38, 0.0 }
 0x76f   :  { %2390 = vadd.xlane.f32.xlu1 %v2389_v20 }
 0x7bb   :  { %v2135_v35 = vpop.f32.mrf.mxu1 }
 0x7bc   :  { %v2136_v39 = vadd.f32 %v2135_v35, %v2072_v30 }
 0x7bd   :  { %v2818_v40 = vpop.f32.mrf.mxu1 }
 0x7be   :  { %2821 = vmatpush3.msra.mxu1 %v2136_v39 }
 0x7bf   :  { %v2138_v41 = vpop.f32.mrf.mxu1  ;;  %2823 = vmatmul.mubr.msk.f32.vlgmr.msra.gmra.mxu1 %vm1792_vm0, %v3493_v47  ;;  %2825 = vmatprep.subr.mxu1 %v3270_v52 }
 0x7c0   :  { %2827 = vmatprep.mubr.msk.f32.mxu1 %vm3271_vm2, %v3270_v52 }
 0x7c1   :  { %v2819_v42 = vpop.f32.mrf.mxu1 }
 0x7f8   :  { %v2391_v44 = vpop.xlane.xlu1 %2390 }
 0x7f9   :  { %v2392_v45 = vmax.f32 %v2391_v44, 1e-24 }
 0x7fb   :  { %3145 = vrsqrt.f32 %v2392_v45 }
 0x808   :  { %v3146_v46 = vpop.eup %3145 }
 0x809   :  { %v2394_v48 = vmul.f32 %v3146_v46, %v2055_v34 }
 0x80b   :  { %v2396_v49 = vrot.slane %v2394_v48, 2  ;;  %v2412_v13 = vrot.slane %v2394_v48, 6 }
 0x80d   :  { %2397 = vrot.lane.b32.xlu1 %v2396_v49, %s3273_s6 }
 0x87f   :  { %v2207_v50 = vpop.f32.mrf.mxu1  ;;  %v2398_v18 = vpop.permute.xlu1 %2397 }
 0x880   :  { %v2211_v51 = vsub.f32 %v2136_v39, %v2207_v50 }
 0x881   :  { %v2824_v55 = vpop.f32.mrf.mxu1 }
 0x882   :  { %v2212_v58 = vmul.f32 %v2211_v51, %v2211_v51 }
 0x884   :  { %2826 = vmatpush3.msra.mxu1 %v2212_v58 }
 0x885   :  { %2828 = vmatmul.mubr.msk.f32.vlgmr.msra.gmra.mxu1 %vm1792_vm0, %v3493_v47  ;;  %2830 = vmatprep.subr.bf16.mxu1 %v3270_v52  ;;  %v3125_v47 = vld [vmem:[%s3603_s8 + $0x8] sm:$0xff]  }
 0x886   :  { %2838 = vmatprep.mubr.msk.bf16.mxu1 %vm3271_vm2, %v3270_v52  ;;  %2831 = vmatpush3.bf16.msra.mxu1 %v3123_v59  ;;  %vm2401_vm2 = vcmask 254976  }
 0x887   :  { %2832 = vmatprep.subr.bf16.mxu1 %v3270_v52 }
 0x88a   :  { %2833 = vmatpush3.bf16.msra.mxu1 %v3124_v60 }
 0x88b   :  { %2834 = vmatprep.subr.bf16.mxu1 %v3270_v52 }
 0x88e   :  { %2835 = vmatpush3.bf16.msra.mxu1 %v3125_v47 }
 0x88f   :  { %2836 = vmatprep.subr.bf16.mxu1 %v3270_v52 }
 0x892   :  { %2837 = vmatpush3.bf16.msra.mxu1 %v3126_v61 }
 0x945   :  { %v2279_v62 = vpop.f32.mrf.mxu1 }
 0x946   :  { %v2280_v63 = vadd.f32 1e-05, %v2279_v62 }
 0x947   :  { %v2829_v0 = vpop.f32.mrf.mxu1 }
 0x948   :  { %3147 = vrsqrt.f32 %v2280_v63 }
 0x955   :  { %v3148_v1 = vpop.eup %3147 }
 0x956   :  { %v2284_v2 = vmul.f32 %v3148_v1, %v2211_v51 }
 0x958   :  { %v2289_v3 = vmul.f32 %v2287_v53, %v2284_v2 }
 0x95a   :  { %v2294_v4 = vadd.f32 %v3551_v32, %v2289_v3 }
 0x95c   :  { %v2295_v5 = vmax.f32 %v2294_v4, 0.0 }
 0x95e   :  { %v2304_v6 = vpack.c.bf16 %v2295_v5, %v2295_v5 }
 0x960   :  { %2839 = vmatmul.mubr.msk.bf16.vlgmr.msra.gmra.mxu1 %vm2097_vm1, %v2304_v6 }
 0xa20   :  { %v2370_v7 = vpop.f32.mrf.mxu1 }
 0xa21   :  { %v2371_v8 = vadd.f32 %v2370_v7, %v2331_v43 }
 0xa22   :  { %v2840_v9 = vpop.f32.mrf.mxu1 }
 0xa23   :  { %v2376_v10 = vmul.f32 %v2371_v8, %v2371_v8 }
 0xa24   :  { %v2373_v11 = vpop.f32.mrf.mxu1 }
 0xa25   :  { %v2378_v52 = vsel %vm2377_vm3, %v2376_v10, 0.0 }
 0xa26   :  { %2379 = vadd.xlane.f32.xlu0 %v2378_v52  ;;  %v2841_v12 = vpop.f32.mrf.mxu1 }
 0xa3c   :  { %2413 = vrot.lane.b32.xlu0 %v2412_v13, %s3273_s6 }
 0xaaf   :  { %v2380_v14 = vpop.xlane.xlu0 %2379 }
 0xab0   :  { %v2381_v15 = vmax.f32 %v2380_v14, 1e-24 }
 0xab2   :  { %3149 = vrsqrt.f32 %v2381_v15 }
 0xab3   :  { %v2414_v21 = vpop.permute.xlu0 %2413 }
 0xabf   :  { %v3150_v16 = vpop.eup %3149 }
 0xac0   :  { %v2383_v17 = vmul.f32 %v3150_v16, %v2371_v8 }
 0xac2   :  { %v2416_v22 = vmul.f32 %v2414_v21, %v2383_v17  ;;  %v2400_v23 = vmul.f32 %v2398_v18, %v2383_v17 }
 0xac4   :  { %v2418_v24 = vrot.slane %v2416_v22, 2  ;;  %v2402_v25 = vsel %vm2401_vm2, %v2400_v23, 0.0 }
 0xac5   :  { %2403 = vadd.xlane.f32.xlu1 %v2402_v25 }
 0xac6   :  { %v2420_v26 = vsel %vm2401_vm2, %v2418_v24, 0.0 }
 0xac7   :  { %2421 = vadd.xlane.f32.xlu0 %v2420_v26 }
 0xb4e   :  { %v2404_v27 = vpop.xlane.xlu1 %2403 }
 0xb4f   :  { %v2405_v28 = vrot.slane %v2404_v27, 4 }
 0xb50   :  { %v2422_v29 = vpop.xlane.xlu0 %2421 }
 0xb51   :  { %v2406_v30 = vadd.f32 %v2405_v28, %v2404_v27  ;;  %v2423_v31 = vrot.slane %v2422_v29, 4 }
 0xb53   :  { %v2407_v32 = vrot.slane %v2406_v30, 2  ;;  %v2424_v19 = vadd.f32 %v2423_v31, %v2422_v29 }
 0xb55   :  { %v2425_v33 = vrot.slane %v2424_v19, 2  ;;  %v2408_v34 = vadd.f32 %v2407_v32, %v2406_v30 }
 0xb57   :  { %v2426_v54 = vadd.f32 %v2425_v33, %v2424_v19  ;;  %v2409_v56 = vrot.slane %v2408_v34, 1 }
 0xb59   :  { %v2410_v36 = vadd.f32 %v2409_v56, %v2408_v34  ;;  %v2427_v37 = vrot.slane %v2426_v54, 1 }
 0xb5b   :  { %2842 = vpush %v2410_v36  ;;  %v2428_v57 = vadd.f32 %v2427_v37, %v2426_v54 }
 0xb5d   :  { %2844 = vpush %v2428_v57 }
 0xb8c   :  { %s2843_s8 = spop %2842 }
 0xb8e   :  { %s2845_s25 = spop %2844 }
 0xb8f   :  { %s2430_s26 = sadd.f32 %s2845_s25, %s2843_s8 }
 0xb91   :  { %s2431_s27 = smul.f32 2.0, %s2430_s26 }
 0xb93   :  { %s2432_s4 = ssub.f32 8.0, %s2431_s27 }
 0xb95   :  { %s2433_s28 = smul.f32 0.5, %s2432_s4 }
 0xb97   :  { %v2437_v53 = vstv %s2433_s28 }
 0xb98   :  { %2438 = vst [vmem:[%s3605_s10 + $0x18] sm:$0xff] %v2437_v53 }
 0xb99   :  { %2443 = vsyncpa [#allocation3], 1 }
 0xb9a   :  { %2444 = vsyncpa [#allocation5], 1 }
 0xb9b   :  { %2445 = vsyncpa [#allocation8], 1 }

</bundles_post_ra>
